<compile_context>
chip_gen: v7x
topology: tpu7x:2x2x1
jax: 0.10.0
libtpu: 0.0.40
codegen_flags: <defaults>
</compile_context>

<pallas_src>
import functools

import jax
import jax.numpy as jnp
import numpy as np
from jax.experimental import pallas as pl
from jax.experimental.pallas import tpu as pltpu


def _pool_matrix_1d(n_in, n_out, k, s, scale):
    """(n_in, n_out) matrix P with P[i, o] = scale iff input index i lies in the
    length-k window (stride s) of output index o.  AvgPool factors as
    Ph @ y @ Pw with the 1/k^2 normalization split across the two factors."""
    P = np.zeros((n_in, n_out), np.float32)
    for o in range(n_out):
        for d in range(k):
            P[o * s + d, o] = scale
    return P


def _vmem_capacity_bytes():
    """Physical per-TensorCore VMEM queried from the hardware; conservative
    (v7x = 64 MiB) fallback if the query is unavailable."""
    try:
        info = pltpu.get_tpu_info()
        for attr in ("vmem_capacity_bytes", "vmem_bytes", "vmem_size_bytes"):
            v = getattr(info, attr, None)
            if isinstance(v, (int, np.integer)) and int(v) > 0:
                return int(v)
    except Exception:
        pass
    return 64 * 1024 * 1024


def _footprint_bytes(bb, tile_h, tile_hout, W, Wout, Cin, Cout, x_itemsize):
    """Per-step pipelined VMEM footprint: double-buffered x / out blocks, the
    (tiny, but still double-buffered by default) factored pool matrices, plus
    slack for in-kernel live f32 values (conv accumulator, H-pooled temp)."""
    return (2 * bb * Cin * tile_h * W * x_itemsize      # x block (2x buffered)
            + 2 * bb * Cout * tile_hout * Wout * 4      # out block (2x buffered)
            + 2 * tile_hout * tile_h * 4                # Ph (2x buffered, ~KB)
            + 2 * W * Wout * 4                          # Pw (2x buffered, ~KB)
            + 4 * tile_h * W * 4)                       # live f32 values + slack


def _choose_tile_h(N, H, W, k, s, Cin, Cout, x_itemsize, vmem_budget):
    """Pick the H tile.  Default is the full image.  H tiling is attempted only
    for the standard non-overlapping case (k == s, H % s == 0), with tiles that
    are multiples of 8*s (x block and pooled output block stay sublane aligned)
    and divide H.  Prefers the largest tile fitting the VMEM budget; when N < 2
    prefers >= 2 tiles so both v7x TensorCores get work."""
    Hout = (H - k) // s + 1
    Wout = (W - k) // s + 1

    def fits(th, thout):
        return _footprint_bytes(1, th, thout, W, Wout, Cin, Cout,
                                x_itemsize) <= vmem_budget

    candidates = [(H, Hout)]                      # full image, always valid
    if k == s and H % s == 0:
        step = 8 * s
        for th in range(step, H, step):
            if H % th == 0:
                candidates.append((th, th // s))
    # TODO(synk): halo-based H tiling for overlapping windows (k != s) at very
    # large H; currently the full image is processed per step in that case.

    fitting = [c for c in candidates if fits(*c)]
    if not fitting:
        return min(candidates, key=lambda c: c[0])
    if N < 2:
        multi = [c for c in fitting if H // c[0] >= 2]
        if multi:
            return max(multi, key=lambda c: c[0])
    return max(fitting, key=lambda c: c[0])


def _choose_batch_block(N, n_tiles, tile_h, tile_hout, W, Wout, Cin, Cout,
                        x_itemsize, vmem_budget):
    """Pack several batch elements per block when the image is processed whole,
    keeping >= 2 grid steps (when N >= 2) so both v7x TensorCores stay busy."""
    if n_tiles != 1:
        return 1
    best = 1
    for bb in range(1, N + 1):
        if N % bb:
            continue
        if N >= 2 and (N // bb) * n_tiles < 2:
            continue
        if _footprint_bytes(bb, tile_h, tile_hout, W, Wout, Cin, Cout,
                            x_itemsize) <= vmem_budget:
            best = bb
    return best


def _vision_adapter_kernel(x_ref, w_ref, shift_ref, ph_ref, pw_ref, o_ref,
                           *, nb, Cin, Cout):
    # x_ref:     (nb, Cin, tile_h, W)         VMEM, source dtype (cast in-kernel)
    # w_ref:     (Cin, Cout)                  SMEM, conv weight with BN scale folded
    # shift_ref: (Cout,)                      SMEM, folded BN shift
    # ph_ref:    (tile_hout, tile_h)          VMEM, H-direction pool matrix (0/1)
    # pw_ref:    (W, Wout)                    VMEM, W-direction pool matrix (1/k^2)
    # o_ref:     (nb, Cout, tile_hout, Wout)  VMEM
    ph = ph_ref[...]
    pw = pw_ref[...]
    for b in range(nb):
        for co in range(Cout):
            # 1x1 conv (+ folded BN scale) on the VPU: Cin scalar*slab FMAs over
            # the full 2-D (tile_h, W) slab; weights/shift are SMEM scalars.
            acc = x_ref[b, 0].astype(jnp.float32) * w_ref[0, co]
            for ci in range(1, Cin):
                acc = acc + x_ref[b, ci].astype(jnp.float32) * w_ref[ci, co]
            y = jnp.maximum(acc + shift_ref[co], 0.0)               # (tile_h, W)
            # Factored AvgPool: small H-direction matmul, then small W-direction
            # matmul.  Kept f32 (tiny after factoring) for 1e-5 reference parity.
            hp = jnp.dot(ph, y, preferred_element_type=jnp.float32)  # (tile_hout, W)
            o_ref[b, co] = jnp.dot(hp, pw,
                                   preferred_element_type=jnp.float32
                                   ).astype(o_ref.dtype)             # (tile_hout, Wout)


def vision_adapter(x_nchw, conv_weight, gamma, beta, running_mean, running_var,
                   *, eps=1e-5, pool_kernel=2, pool_stride=2):
    """Forward pass of VisionAdapter. x_nchw: (N, Cin, H, W) -> (N, Cout, Hout, Wout)."""
    N, Cin, H, W = x_nchw.shape
    Cout = conv_weight.shape[0]
    k, s = pool_kernel, pool_stride
    Hout = (H - k) // s + 1
    Wout = (W - k) // s + 1

    # Fold eval-mode BN: y*scale + shift, with scale absorbed into the conv weight.
    scale = (gamma / jnp.sqrt(running_var + eps)).astype(jnp.float32)            # (Cout,)
    shift = (beta - running_mean * scale).astype(jnp.float32)                    # (Cout,)
    w = (conv_weight.reshape(Cout, Cin).T.astype(jnp.float32) * scale[None, :])  # (Cin, Cout)

    vmem_phys = _vmem_capacity_bytes()
    vmem_budget = vmem_phys // 4        # ~16 MiB on v7x, ~32 MiB on v5e/v6e
    vmem_limit = vmem_phys // 2         # <=32 MiB on v7x, <=64 MiB on v5e/v6e

    x_itemsize = int(x_nchw.dtype.itemsize)
    tile_h, tile_hout = _choose_tile_h(N, H, W, k, s, Cin, Cout,
                                       x_itemsize, vmem_budget)
    n_tiles = H // tile_h
    bb = _choose_batch_block(N, n_tiles, tile_h, tile_hout, W, Wout, Cin, Cout,
                             x_itemsize, vmem_budget)
    n_batch_blocks = N // bb
    assert n_tiles * tile_hout == Hout, "H tiling inconsistent with pooled output"

    # Factored pool matrices (~KBs instead of the dense (H*W, Hout*Wout) matrix).
    ph = jnp.asarray(_pool_matrix_1d(tile_h, tile_hout, k, s, 1.0).T)            # (tile_hout, tile_h)
    pw = jnp.asarray(_pool_matrix_1d(W, Wout, k, s, 1.0 / (k * k)))              # (W, Wout)

    kernel = functools.partial(_vision_adapter_kernel, nb=bb, Cin=Cin, Cout=Cout)

    cost = pl.CostEstimate(
        flops=(2 * N * Cin * Cout * H * W
               + 2 * N * n_tiles * Cout * tile_hout * tile_h * W
               + 2 * N * n_tiles * Cout * tile_hout * W * Wout),
        transcendentals=0,
        bytes_accessed=(x_nchw.size * x_itemsize + int(w.size) * 4
                        + int(shift.size) * 4 + int(ph.size) * 4 + int(pw.size) * 4
                        + N * Cout * Hout * Wout * 4),
    )

    out = pl.pallas_call(
        kernel,
        out_shape=jax.ShapeDtypeStruct((N, Cout, Hout, Wout), jnp.float32),
        grid_spec=pltpu.PrefetchScalarGridSpec(
            num_scalar_prefetch=0,
            grid=(n_batch_blocks, n_tiles),
            in_specs=[
                pl.BlockSpec((bb, Cin, tile_h, W), lambda n, t: (n, 0, t, 0)),    # x (source dtype)
                pl.BlockSpec(memory_space=pltpu.MemorySpace.SMEM),                # folded weight
                pl.BlockSpec(memory_space=pltpu.MemorySpace.SMEM),                # folded shift
                pl.BlockSpec((tile_hout, tile_h), lambda n, t: (0, 0)),           # Ph (constant, tiny)
                pl.BlockSpec((W, Wout), lambda n, t: (0, 0)),                     # Pw (constant, tiny)
            ],
            out_specs=pl.BlockSpec((bb, Cout, tile_hout, Wout),
                                   lambda n, t: (n, 0, t, 0)),
        ),
        compiler_params=pltpu.CompilerParams(
            dimension_semantics=("parallel", "parallel"),
            vmem_limit_bytes=vmem_limit,
        ),
        cost_estimate=cost,
    )(x_nchw, w, shift, ph, pw)

    return out


def _reference(x_nchw, conv_weight, gamma, beta, running_mean, running_var,
               *, eps=1e-5, pool_kernel=2, pool_stride=2):
    """Plain-JAX reference mirroring the PyTorch forward (eval-mode BN)."""
    N, Cin, H, W = x_nchw.shape
    Cout = conv_weight.shape[0]
    k, s = pool_kernel, pool_stride
    w = conv_weight.reshape(Cout, Cin)
    y = jnp.einsum("oc,nchw->nohw", w, x_nchw)
    scale = gamma / jnp.sqrt(running_var + eps)
    y = y * scale[None, :, None, None] + (beta - running_mean * scale)[None, :, None, None]
    y = jnp.maximum(y, 0.0)
    Hout = (H - k) // s + 1
    Wout = (W - k) // s + 1
    acc = jnp.zeros((N, Cout, Hout, Wout), jnp.float32)
    for dh in range(k):
        for dw in range(k):
            acc = acc + y[:, :, dh:dh + s * Hout:s, dw:dw + s * Wout:s]
    return acc / (k * k)


if __name__ == "__main__":
    # Small shapes consistent with the module:
    #   batch=2, in_dim=4, spatial=16x16, out_dim=8, pool kernel=2, stride=2
    N, Cin, H, W = 2, 4, 16, 16
    Cout = 8
    pool_kernel, pool_stride = 2, 2

    key = jax.random.PRNGKey(0)
    kx, kw, kg, kb, km, kv = jax.random.split(key, 6)

    x = jax.random.normal(kx, (N, Cin, H, W), dtype=jnp.float32)
    conv_weight = jax.random.normal(kw, (Cout, Cin, 1, 1), dtype=jnp.float32) * 0.1
    gamma = 1.0 + 0.1 * jax.random.normal(kg, (Cout,), dtype=jnp.float32)
    beta = 0.1 * jax.random.normal(kb, (Cout,), dtype=jnp.float32)
    running_mean = 0.1 * jax.random.normal(km, (Cout,), dtype=jnp.float32)
    running_var = 1.0 + 0.1 * jax.random.uniform(kv, (Cout,), dtype=jnp.float32)

    out = vision_adapter(x, conv_weight, gamma, beta, running_mean, running_var,
                         pool_kernel=pool_kernel, pool_stride=pool_stride)
    out = jax.block_until_ready(out)

    ref = _reference(x, conv_weight, gamma, beta, running_mean, running_var,
                     pool_kernel=pool_kernel, pool_stride=pool_stride)
    Hout = (H - pool_kernel) // pool_stride + 1
    Wout = (W - pool_kernel) // pool_stride + 1
    assert out.shape == (N, Cout, Hout, Wout), out.shape
    max_err = float(jnp.max(jnp.abs(out - ref)))
    assert jnp.allclose(out, ref, atol=1e-5, rtol=1e-5), f"mismatch vs reference (max abs err {max_err})"

    print("KERNEL_OK")
</pallas_src>

<mosaic_0001>
module attributes {stable_mosaic.version = 11 : i64} {
  func.func @_vision_adapter_kernel(%arg0: i32, %arg1: i32, %arg2: memref<1x4x16x16xf32, #tpu.memory_space<vmem>>, %arg3: memref<4x8xf32, #tpu.memory_space<smem>>, %arg4: memref<8xf32, #tpu.memory_space<smem>>, %arg5: memref<8x16xf32, #tpu.memory_space<vmem>>, %arg6: memref<16x8xf32, #tpu.memory_space<vmem>>, %arg7: memref<1x8x8x8xf32, #tpu.memory_space<vmem>>) attributes {dimension_semantics = [#tpu.dimension_semantics<parallel>, #tpu.dimension_semantics<parallel>], iteration_bounds = array<i64: 2, 1>, scalar_prefetch = 0 : i64, scratch_operands = 0 : i64, tpu.core_type = #tpu.core_type<tc>, window_params = [{transform_indices = @transform_0, window_bounds = array<i64: 1, 4, 16, 16>}, {transform_indices = @transform_1, window_bounds = array<i64: 4, 8>}, {transform_indices = @transform_2, window_bounds = array<i64: 8>}, {pipeline_mode = #tpu.pipeline_mode<synchronous>, transform_indices = @transform_3, window_bounds = array<i64: 8, 16>}, {pipeline_mode = #tpu.pipeline_mode<synchronous>, transform_indices = @transform_4, window_bounds = array<i64: 16, 8>}, {transform_indices = @transform_5, window_bounds = array<i64: 1, 8, 8, 8>}]} {
    %c0 = arith.constant 0 : index
    %c0_0 = arith.constant 0 : index
    %0 = vector.load %arg5[%c0, %c0_0] : memref<8x16xf32, #tpu.memory_space<vmem>>, vector<8x16xf32>
    %c0_1 = arith.constant 0 : index
    %c0_2 = arith.constant 0 : index
    %1 = vector.load %arg6[%c0_1, %c0_2] : memref<16x8xf32, #tpu.memory_space<vmem>>, vector<16x8xf32>
    %c0_3 = arith.constant 0 : index
    %c0_4 = arith.constant 0 : index
    %c0_5 = arith.constant 0 : index
    %c0_6 = arith.constant 0 : index
    %2 = vector.load %arg2[%c0_3, %c0_4, %c0_5, %c0_6] : memref<1x4x16x16xf32, #tpu.memory_space<vmem>>, vector<1x1x16x16xf32>
    %3 = vector.shape_cast %2 : vector<1x1x16x16xf32> to vector<16x16xf32>
    %c0_7 = arith.constant 0 : index
    %c0_8 = arith.constant 0 : index
    %4 = memref.load %arg3[%c0_7, %c0_8] : memref<4x8xf32, #tpu.memory_space<smem>>
    %5 = vector.broadcast %4 : f32 to vector<16x16xf32>
    %6 = arith.mulf %3, %5 : vector<16x16xf32>
    %c0_9 = arith.constant 0 : index
    %c1 = arith.constant 1 : index
    %c0_10 = arith.constant 0 : index
    %c0_11 = arith.constant 0 : index
    %7 = vector.load %arg2[%c0_9, %c1, %c0_10, %c0_11] : memref<1x4x16x16xf32, #tpu.memory_space<vmem>>, vector<1x1x16x16xf32>
    %8 = vector.shape_cast %7 : vector<1x1x16x16xf32> to vector<16x16xf32>
    %c1_12 = arith.constant 1 : index
    %c0_13 = arith.constant 0 : index
    %9 = memref.load %arg3[%c1_12, %c0_13] : memref<4x8xf32, #tpu.memory_space<smem>>
    %10 = vector.broadcast %9 : f32 to vector<16x16xf32>
    %11 = arith.mulf %8, %10 : vector<16x16xf32>
    %12 = arith.addf %6, %11 : vector<16x16xf32>
    %c0_14 = arith.constant 0 : index
    %c2 = arith.constant 2 : index
    %c0_15 = arith.constant 0 : index
    %c0_16 = arith.constant 0 : index
    %13 = vector.load %arg2[%c0_14, %c2, %c0_15, %c0_16] : memref<1x4x16x16xf32, #tpu.memory_space<vmem>>, vector<1x1x16x16xf32>
    %14 = vector.shape_cast %13 : vector<1x1x16x16xf32> to vector<16x16xf32>
    %c2_17 = arith.constant 2 : index
    %c0_18 = arith.constant 0 : index
    %15 = memref.load %arg3[%c2_17, %c0_18] : memref<4x8xf32, #tpu.memory_space<smem>>
    %16 = vector.broadcast %15 : f32 to vector<16x16xf32>
    %17 = arith.mulf %14, %16 : vector<16x16xf32>
    %18 = arith.addf %12, %17 : vector<16x16xf32>
    %c0_19 = arith.constant 0 : index
    %c3 = arith.constant 3 : index
    %c0_20 = arith.constant 0 : index
    %c0_21 = arith.constant 0 : index
    %19 = vector.load %arg2[%c0_19, %c3, %c0_20, %c0_21] : memref<1x4x16x16xf32, #tpu.memory_space<vmem>>, vector<1x1x16x16xf32>
    %20 = vector.shape_cast %19 : vector<1x1x16x16xf32> to vector<16x16xf32>
    %c3_22 = arith.constant 3 : index
    %c0_23 = arith.constant 0 : index
    %21 = memref.load %arg3[%c3_22, %c0_23] : memref<4x8xf32, #tpu.memory_space<smem>>
    %22 = vector.broadcast %21 : f32 to vector<16x16xf32>
    %23 = arith.mulf %20, %22 : vector<16x16xf32>
    %24 = arith.addf %18, %23 : vector<16x16xf32>
    %c0_24 = arith.constant 0 : index
    %25 = memref.load %arg4[%c0_24] : memref<8xf32, #tpu.memory_space<smem>>
    %26 = vector.broadcast %25 : f32 to vector<16x16xf32>
    %27 = arith.addf %24, %26 : vector<16x16xf32>
    %cst = arith.constant 0.000000e+00 : f32
    %28 = vector.broadcast %cst : f32 to vector<16x16xf32>
    %29 = arith.maximumf %27, %28 : vector<16x16xf32>
    %cst_25 = arith.constant dense<0.000000e+00> : vector<8x16xf32>
    %30 = tpu.matmul %0, %29, %cst_25 {dimension_numbers = #tpu.dot_dimension_numbers<[1], [0], [0], [1], [0, 0, 1, 1], [], []>} : vector<8x16xf32>, vector<16x16xf32>, vector<8x16xf32> -> vector<8x16xf32>
    %cst_26 = arith.constant dense<0.000000e+00> : vector<8x8xf32>
    %31 = tpu.matmul %30, %1, %cst_26 {dimension_numbers = #tpu.dot_dimension_numbers<[1], [0], [0], [1], [0, 0, 1, 1], [], []>} : vector<8x16xf32>, vector<16x8xf32>, vector<8x8xf32> -> vector<8x8xf32>
    %c0_27 = arith.constant 0 : index
    %c0_28 = arith.constant 0 : index
    %c0_29 = arith.constant 0 : index
    %c0_30 = arith.constant 0 : index
    %32 = vector.load %arg7[%c0_27, %c0_28, %c0_29, %c0_30] : memref<1x8x8x8xf32, #tpu.memory_space<vmem>>, vector<1x1x8x8xf32>
    %33 = vector.shape_cast %32 : vector<1x1x8x8xf32> to vector<8x8xf32>
    %34 = vector.shape_cast %31 : vector<8x8xf32> to vector<1x1x8x8xf32>
    tpu.vector_store %arg7[%c0_27, %c0_28, %c0_29, %c0_30], %34 {strides = array<i32>} : memref<1x8x8x8xf32, #tpu.memory_space<vmem>>, vector<1x1x8x8xf32>,
    %c0_31 = arith.constant 0 : index
    %c0_32 = arith.constant 0 : index
    %c0_33 = arith.constant 0 : index
    %c0_34 = arith.constant 0 : index
    %35 = vector.load %arg2[%c0_31, %c0_32, %c0_33, %c0_34] : memref<1x4x16x16xf32, #tpu.memory_space<vmem>>, vector<1x1x16x16xf32>
    %36 = vector.shape_cast %35 : vector<1x1x16x16xf32> to vector<16x16xf32>
    %c0_35 = arith.constant 0 : index
    %c1_36 = arith.constant 1 : index
    %37 = memref.load %arg3[%c0_35, %c1_36] : memref<4x8xf32, #tpu.memory_space<smem>>
    %38 = vector.broadcast %37 : f32 to vector<16x16xf32>
    %39 = arith.mulf %36, %38 : vector<16x16xf32>
    %c0_37 = arith.constant 0 : index
    %c1_38 = arith.constant 1 : index
    %c0_39 = arith.constant 0 : index
    %c0_40 = arith.constant 0 : index
    %40 = vector.load %arg2[%c0_37, %c1_38, %c0_39, %c0_40] : memref<1x4x16x16xf32, #tpu.memory_space<vmem>>, vector<1x1x16x16xf32>
    %41 = vector.shape_cast %40 : vector<1x1x16x16xf32> to vector<16x16xf32>
    %c1_41 = arith.constant 1 : index
    %c1_42 = arith.constant 1 : index
    %42 = memref.load %arg3[%c1_41, %c1_42] : memref<4x8xf32, #tpu.memory_space<smem>>
    %43 = vector.broadcast %42 : f32 to vector<16x16xf32>
    %44 = arith.mulf %41, %43 : vector<16x16xf32>
    %45 = arith.addf %39, %44 : vector<16x16xf32>
    %c0_43 = arith.constant 0 : index
    %c2_44 = arith.constant 2 : index
    %c0_45 = arith.constant 0 : index
    %c0_46 = arith.constant 0 : index
    %46 = vector.load %arg2[%c0_43, %c2_44, %c0_45, %c0_46] : memref<1x4x16x16xf32, #tpu.memory_space<vmem>>, vector<1x1x16x16xf32>
    %47 = vector.shape_cast %46 : vector<1x1x16x16xf32> to vector<16x16xf32>
    %c2_47 = arith.constant 2 : index
    %c1_48 = arith.constant 1 : index
    %48 = memref.load %arg3[%c2_47, %c1_48] : memref<4x8xf32, #tpu.memory_space<smem>>
    %49 = vector.broadcast %48 : f32 to vector<16x16xf32>
    %50 = arith.mulf %47, %49 : vector<16x16xf32>
    %51 = arith.addf %45, %50 : vector<16x16xf32>
    %c0_49 = arith.constant 0 : index
    %c3_50 = arith.constant 3 : index
    %c0_51 = arith.constant 0 : index
    %c0_52 = arith.constant 0 : index
    %52 = vector.load %arg2[%c0_49, %c3_50, %c0_51, %c0_52] : memref<1x4x16x16xf32, #tpu.memory_space<vmem>>, vector<1x1x16x16xf32>
    %53 = vector.shape_cast %52 : vector<1x1x16x16xf32> to vector<16x16xf32>
    %c3_53 = arith.constant 3 : index
    %c1_54 = arith.constant 1 : index
    %54 = memref.load %arg3[%c3_53, %c1_54] : memref<4x8xf32, #tpu.memory_space<smem>>
    %55 = vector.broadcast %54 : f32 to vector<16x16xf32>
    %56 = arith.mulf %53, %55 : vector<16x16xf32>
    %57 = arith.addf %51, %56 : vector<16x16xf32>
    %c1_55 = arith.constant 1 : index
    %58 = memref.load %arg4[%c1_55] : memref<8xf32, #tpu.memory_space<smem>>
    %59 = vector.broadcast %58 : f32 to vector<16x16xf32>
    %60 = arith.addf %57, %59 : vector<16x16xf32>
    %cst_56 = arith.constant 0.000000e+00 : f32
    %61 = vector.broadcast %cst_56 : f32 to vector<16x16xf32>
    %62 = arith.maximumf %60, %61 : vector<16x16xf32>
    %cst_57 = arith.constant dense<0.000000e+00> : vector<8x16xf32>
    %63 = tpu.matmul %0, %62, %cst_57 {dimension_numbers = #tpu.dot_dimension_numbers<[1], [0], [0], [1], [0, 0, 1, 1], [], []>} : vector<8x16xf32>, vector<16x16xf32>, vector<8x16xf32> -> vector<8x16xf32>
    %cst_58 = arith.constant dense<0.000000e+00> : vector<8x8xf32>
    %64 = tpu.matmul %63, %1, %cst_58 {dimension_numbers = #tpu.dot_dimension_numbers<[1], [0], [0], [1], [0, 0, 1, 1], [], []>} : vector<8x16xf32>, vector<16x8xf32>, vector<8x8xf32> -> vector<8x8xf32>
    %c0_59 = arith.constant 0 : index
    %c1_60 = arith.constant 1 : index
    %c0_61 = arith.constant 0 : index
    %c0_62 = arith.constant 0 : index
    %65 = vector.load %arg7[%c0_59, %c1_60, %c0_61, %c0_62] : memref<1x8x8x8xf32, #tpu.memory_space<vmem>>, vector<1x1x8x8xf32>
    %66 = vector.shape_cast %65 : vector<1x1x8x8xf32> to vector<8x8xf32>
    %67 = vector.shape_cast %64 : vector<8x8xf32> to vector<1x1x8x8xf32>
    tpu.vector_store %arg7[%c0_59, %c1_60, %c0_61, %c0_62], %67 {strides = array<i32>} : memref<1x8x8x8xf32, #tpu.memory_space<vmem>>, vector<1x1x8x8xf32>,
    %c0_63 = arith.constant 0 : index
    %c0_64 = arith.constant 0 : index
    %c0_65 = arith.constant 0 : index
    %c0_66 = arith.constant 0 : index
    %68 = vector.load %arg2[%c0_63, %c0_64, %c0_65, %c0_66] : memref<1x4x16x16xf32, #tpu.memory_space<vmem>>, vector<1x1x16x16xf32>
    %69 = vector.shape_cast %68 : vector<1x1x16x16xf32> to vector<16x16xf32>
    %c0_67 = arith.constant 0 : index
    %c2_68 = arith.constant 2 : index
    %70 = memref.load %arg3[%c0_67, %c2_68] : memref<4x8xf32, #tpu.memory_space<smem>>
    %71 = vector.broadcast %70 : f32 to vector<16x16xf32>
    %72 = arith.mulf %69, %71 : vector<16x16xf32>
    %c0_69 = arith.constant 0 : index
    %c1_70 = arith.constant 1 : index
    %c0_71 = arith.constant 0 : index
    %c0_72 = arith.constant 0 : index
    %73 = vector.load %arg2[%c0_69, %c1_70, %c0_71, %c0_72] : memref<1x4x16x16xf32, #tpu.memory_space<vmem>>, vector<1x1x16x16xf32>
    %74 = vector.shape_cast %73 : vector<1x1x16x16xf32> to vector<16x16xf32>
    %c1_73 = arith.constant 1 : index
    %c2_74 = arith.constant 2 : index
    %75 = memref.load %arg3[%c1_73, %c2_74] : memref<4x8xf32, #tpu.memory_space<smem>>
    %76 = vector.broadcast %75 : f32 to vector<16x16xf32>
    %77 = arith.mulf %74, %76 : vector<16x16xf32>
    %78 = arith.addf %72, %77 : vector<16x16xf32>
    %c0_75 = arith.constant 0 : index
    %c2_76 = arith.constant 2 : index
    %c0_77 = arith.constant 0 : index
    %c0_78 = arith.constant 0 : index
    %79 = vector.load %arg2[%c0_75, %c2_76, %c0_77, %c0_78] : memref<1x4x16x16xf32, #tpu.memory_space<vmem>>, vector<1x1x16x16xf32>
    %80 = vector.shape_cast %79 : vector<1x1x16x16xf32> to vector<16x16xf32>
    %c2_79 = arith.constant 2 : index
    %c2_80 = arith.constant 2 : index
    %81 = memref.load %arg3[%c2_79, %c2_80] : memref<4x8xf32, #tpu.memory_space<smem>>
    %82 = vector.broadcast %81 : f32 to vector<16x16xf32>
    %83 = arith.mulf %80, %82 : vector<16x16xf32>
    %84 = arith.addf %78, %83 : vector<16x16xf32>
    %c0_81 = arith.constant 0 : index
    %c3_82 = arith.constant 3 : index
    %c0_83 = arith.constant 0 : index
    %c0_84 = arith.constant 0 : index
    %85 = vector.load %arg2[%c0_81, %c3_82, %c0_83, %c0_84] : memref<1x4x16x16xf32, #tpu.memory_space<vmem>>, vector<1x1x16x16xf32>
    %86 = vector.shape_cast %85 : vector<1x1x16x16xf32> to vector<16x16xf32>
    %c3_85 = arith.constant 3 : index
    %c2_86 = arith.constant 2 : index
    %87 = memref.load %arg3[%c3_85, %c2_86] : memref<4x8xf32, #tpu.memory_space<smem>>
    %88 = vector.broadcast %87 : f32 to vector<16x16xf32>
    %89 = arith.mulf %86, %88 : vector<16x16xf32>
    %90 = arith.addf %84, %89 : vector<16x16xf32>
    %c2_87 = arith.constant 2 : index
    %91 = memref.load %arg4[%c2_87] : memref<8xf32, #tpu.memory_space<smem>>
    %92 = vector.broadcast %91 : f32 to vector<16x16xf32>
    %93 = arith.addf %90, %92 : vector<16x16xf32>
    %cst_88 = arith.constant 0.000000e+00 : f32
    %94 = vector.broadcast %cst_88 : f32 to vector<16x16xf32>
    %95 = arith.maximumf %93, %94 : vector<16x16xf32>
    %cst_89 = arith.constant dense<0.000000e+00> : vector<8x16xf32>
    %96 = tpu.matmul %0, %95, %cst_89 {dimension_numbers = #tpu.dot_dimension_numbers<[1], [0], [0], [1], [0, 0, 1, 1], [], []>} : vector<8x16xf32>, vector<16x16xf32>, vector<8x16xf32> -> vector<8x16xf32>
    %cst_90 = arith.constant dense<0.000000e+00> : vector<8x8xf32>
    %97 = tpu.matmul %96, %1, %cst_90 {dimension_numbers = #tpu.dot_dimension_numbers<[1], [0], [0], [1], [0, 0, 1, 1], [], []>} : vector<8x16xf32>, vector<16x8xf32>, vector<8x8xf32> -> vector<8x8xf32>
    %c0_91 = arith.constant 0 : index
    %c2_92 = arith.constant 2 : index
    %c0_93 = arith.constant 0 : index
    %c0_94 = arith.constant 0 : index
    %98 = vector.load %arg7[%c0_91, %c2_92, %c0_93, %c0_94] : memref<1x8x8x8xf32, #tpu.memory_space<vmem>>, vector<1x1x8x8xf32>
    %99 = vector.shape_cast %98 : vector<1x1x8x8xf32> to vector<8x8xf32>
    %100 = vector.shape_cast %97 : vector<8x8xf32> to vector<1x1x8x8xf32>
    tpu.vector_store %arg7[%c0_91, %c2_92, %c0_93, %c0_94], %100 {strides = array<i32>} : memref<1x8x8x8xf32, #tpu.memory_space<vmem>>, vector<1x1x8x8xf32>,
    %c0_95 = arith.constant 0 : index
    %c0_96 = arith.constant 0 : index
    %c0_97 = arith.constant 0 : index
    %c0_98 = arith.constant 0 : index
    %101 = vector.load %arg2[%c0_95, %c0_96, %c0_97, %c0_98] : memref<1x4x16x16xf32, #tpu.memory_space<vmem>>, vector<1x1x16x16xf32>
    %102 = vector.shape_cast %101 : vector<1x1x16x16xf32> to vector<16x16xf32>
    %c0_99 = arith.constant 0 : index
    %c3_100 = arith.constant 3 : index
    %103 = memref.load %arg3[%c0_99, %c3_100] : memref<4x8xf32, #tpu.memory_space<smem>>
    %104 = vector.broadcast %103 : f32 to vector<16x16xf32>
    %105 = arith.mulf %102, %104 : vector<16x16xf32>
    %c0_101 = arith.constant 0 : index
    %c1_102 = arith.constant 1 : index
    %c0_103 = arith.constant 0 : index
    %c0_104 = arith.constant 0 : index
    %106 = vector.load %arg2[%c0_101, %c1_102, %c0_103, %c0_104] : memref<1x4x16x16xf32, #tpu.memory_space<vmem>>, vector<1x1x16x16xf32>
    %107 = vector.shape_cast %106 : vector<1x1x16x16xf32> to vector<16x16xf32>
    %c1_105 = arith.constant 1 : index
    %c3_106 = arith.constant 3 : index
    %108 = memref.load %arg3[%c1_105, %c3_106] : memref<4x8xf32, #tpu.memory_space<smem>>
    %109 = vector.broadcast %108 : f32 to vector<16x16xf32>
    %110 = arith.mulf %107, %109 : vector<16x16xf32>
    %111 = arith.addf %105, %110 : vector<16x16xf32>
    %c0_107 = arith.constant 0 : index
    %c2_108 = arith.constant 2 : index
    %c0_109 = arith.constant 0 : index
    %c0_110 = arith.constant 0 : index
    %112 = vector.load %arg2[%c0_107, %c2_108, %c0_109, %c0_110] : memref<1x4x16x16xf32, #tpu.memory_space<vmem>>, vector<1x1x16x16xf32>
    %113 = vector.shape_cast %112 : vector<1x1x16x16xf32> to vector<16x16xf32>
    %c2_111 = arith.constant 2 : index
    %c3_112 = arith.constant 3 : index
    %114 = memref.load %arg3[%c2_111, %c3_112] : memref<4x8xf32, #tpu.memory_space<smem>>
    %115 = vector.broadcast %114 : f32 to vector<16x16xf32>
    %116 = arith.mulf %113, %115 : vector<16x16xf32>
    %117 = arith.addf %111, %116 : vector<16x16xf32>
    %c0_113 = arith.constant 0 : index
    %c3_114 = arith.constant 3 : index
    %c0_115 = arith.constant 0 : index
    %c0_116 = arith.constant 0 : index
    %118 = vector.load %arg2[%c0_113, %c3_114, %c0_115, %c0_116] : memref<1x4x16x16xf32, #tpu.memory_space<vmem>>, vector<1x1x16x16xf32>
    %119 = vector.shape_cast %118 : vector<1x1x16x16xf32> to vector<16x16xf32>
    %c3_117 = arith.constant 3 : index
    %c3_118 = arith.constant 3 : index
    %120 = memref.load %arg3[%c3_117, %c3_118] : memref<4x8xf32, #tpu.memory_space<smem>>
    %121 = vector.broadcast %120 : f32 to vector<16x16xf32>
    %122 = arith.mulf %119, %121 : vector<16x16xf32>
    %123 = arith.addf %117, %122 : vector<16x16xf32>
    %c3_119 = arith.constant 3 : index
    %124 = memref.load %arg4[%c3_119] : memref<8xf32, #tpu.memory_space<smem>>
    %125 = vector.broadcast %124 : f32 to vector<16x16xf32>
    %126 = arith.addf %123, %125 : vector<16x16xf32>
    %cst_120 = arith.constant 0.000000e+00 : f32
    %127 = vector.broadcast %cst_120 : f32 to vector<16x16xf32>
    %128 = arith.maximumf %126, %127 : vector<16x16xf32>
    %cst_121 = arith.constant dense<0.000000e+00> : vector<8x16xf32>
    %129 = tpu.matmul %0, %128, %cst_121 {dimension_numbers = #tpu.dot_dimension_numbers<[1], [0], [0], [1], [0, 0, 1, 1], [], []>} : vector<8x16xf32>, vector<16x16xf32>, vector<8x16xf32> -> vector<8x16xf32>
    %cst_122 = arith.constant dense<0.000000e+00> : vector<8x8xf32>
    %130 = tpu.matmul %129, %1, %cst_122 {dimension_numbers = #tpu.dot_dimension_numbers<[1], [0], [0], [1], [0, 0, 1, 1], [], []>} : vector<8x16xf32>, vector<16x8xf32>, vector<8x8xf32> -> vector<8x8xf32>
    %c0_123 = arith.constant 0 : index
    %c3_124 = arith.constant 3 : index
    %c0_125 = arith.constant 0 : index
    %c0_126 = arith.constant 0 : index
    %131 = vector.load %arg7[%c0_123, %c3_124, %c0_125, %c0_126] : memref<1x8x8x8xf32, #tpu.memory_space<vmem>>, vector<1x1x8x8xf32>
    %132 = vector.shape_cast %131 : vector<1x1x8x8xf32> to vector<8x8xf32>
    %133 = vector.shape_cast %130 : vector<8x8xf32> to vector<1x1x8x8xf32>
    tpu.vector_store %arg7[%c0_123, %c3_124, %c0_125, %c0_126], %133 {strides = array<i32>} : memref<1x8x8x8xf32, #tpu.memory_space<vmem>>, vector<1x1x8x8xf32>,
    %c0_127 = arith.constant 0 : index
    %c0_128 = arith.constant 0 : index
    %c0_129 = arith.constant 0 : index
    %c0_130 = arith.constant 0 : index
    %134 = vector.load %arg2[%c0_127, %c0_128, %c0_129, %c0_130] : memref<1x4x16x16xf32, #tpu.memory_space<vmem>>, vector<1x1x16x16xf32>
    %135 = vector.shape_cast %134 : vector<1x1x16x16xf32> to vector<16x16xf32>
    %c0_131 = arith.constant 0 : index
    %c4 = arith.constant 4 : index
    %136 = memref.load %arg3[%c0_131, %c4] : memref<4x8xf32, #tpu.memory_space<smem>>
    %137 = vector.broadcast %136 : f32 to vector<16x16xf32>
    %138 = arith.mulf %135, %137 : vector<16x16xf32>
    %c0_132 = arith.constant 0 : index
    %c1_133 = arith.constant 1 : index
    %c0_134 = arith.constant 0 : index
    %c0_135 = arith.constant 0 : index
    %139 = vector.load %arg2[%c0_132, %c1_133, %c0_134, %c0_135] : memref<1x4x16x16xf32, #tpu.memory_space<vmem>>, vector<1x1x16x16xf32>
    %140 = vector.shape_cast %139 : vector<1x1x16x16xf32> to vector<16x16xf32>
    %c1_136 = arith.constant 1 : index
    %c4_137 = arith.constant 4 : index
    %141 = memref.load %arg3[%c1_136, %c4_137] : memref<4x8xf32, #tpu.memory_space<smem>>
    %142 = vector.broadcast %141 : f32 to vector<16x16xf32>
    %143 = arith.mulf %140, %142 : vector<16x16xf32>
    %144 = arith.addf %138, %143 : vector<16x16xf32>
    %c0_138 = arith.constant 0 : index
    %c2_139 = arith.constant 2 : index
    %c0_140 = arith.constant 0 : index
    %c0_141 = arith.constant 0 : index
    %145 = vector.load %arg2[%c0_138, %c2_139, %c0_140, %c0_141] : memref<1x4x16x16xf32, #tpu.memory_space<vmem>>, vector<1x1x16x16xf32>
    %146 = vector.shape_cast %145 : vector<1x1x16x16xf32> to vector<16x16xf32>
    %c2_142 = arith.constant 2 : index
    %c4_143 = arith.constant 4 : index
    %147 = memref.load %arg3[%c2_142, %c4_143] : memref<4x8xf32, #tpu.memory_space<smem>>
    %148 = vector.broadcast %147 : f32 to vector<16x16xf32>
    %149 = arith.mulf %146, %148 : vector<16x16xf32>
    %150 = arith.addf %144, %149 : vector<16x16xf32>
    %c0_144 = arith.constant 0 : index
    %c3_145 = arith.constant 3 : index
    %c0_146 = arith.constant 0 : index
    %c0_147 = arith.constant 0 : index
    %151 = vector.load %arg2[%c0_144, %c3_145, %c0_146, %c0_147] : memref<1x4x16x16xf32, #tpu.memory_space<vmem>>, vector<1x1x16x16xf32>
    %152 = vector.shape_cast %151 : vector<1x1x16x16xf32> to vector<16x16xf32>
    %c3_148 = arith.constant 3 : index
    %c4_149 = arith.constant 4 : index
    %153 = memref.load %arg3[%c3_148, %c4_149] : memref<4x8xf32, #tpu.memory_space<smem>>
    %154 = vector.broadcast %153 : f32 to vector<16x16xf32>
    %155 = arith.mulf %152, %154 : vector<16x16xf32>
    %156 = arith.addf %150, %155 : vector<16x16xf32>
    %c4_150 = arith.constant 4 : index
    %157 = memref.load %arg4[%c4_150] : memref<8xf32, #tpu.memory_space<smem>>
    %158 = vector.broadcast %157 : f32 to vector<16x16xf32>
    %159 = arith.addf %156, %158 : vector<16x16xf32>
    %cst_151 = arith.constant 0.000000e+00 : f32
    %160 = vector.broadcast %cst_151 : f32 to vector<16x16xf32>
    %161 = arith.maximumf %159, %160 : vector<16x16xf32>
    %cst_152 = arith.constant dense<0.000000e+00> : vector<8x16xf32>
    %162 = tpu.matmul %0, %161, %cst_152 {dimension_numbers = #tpu.dot_dimension_numbers<[1], [0], [0], [1], [0, 0, 1, 1], [], []>} : vector<8x16xf32>, vector<16x16xf32>, vector<8x16xf32> -> vector<8x16xf32>
    %cst_153 = arith.constant dense<0.000000e+00> : vector<8x8xf32>
    %163 = tpu.matmul %162, %1, %cst_153 {dimension_numbers = #tpu.dot_dimension_numbers<[1], [0], [0], [1], [0, 0, 1, 1], [], []>} : vector<8x16xf32>, vector<16x8xf32>, vector<8x8xf32> -> vector<8x8xf32>
    %c0_154 = arith.constant 0 : index
    %c4_155 = arith.constant 4 : index
    %c0_156 = arith.constant 0 : index
    %c0_157 = arith.constant 0 : index
    %164 = vector.load %arg7[%c0_154, %c4_155, %c0_156, %c0_157] : memref<1x8x8x8xf32, #tpu.memory_space<vmem>>, vector<1x1x8x8xf32>
    %165 = vector.shape_cast %164 : vector<1x1x8x8xf32> to vector<8x8xf32>
    %166 = vector.shape_cast %163 : vector<8x8xf32> to vector<1x1x8x8xf32>
    tpu.vector_store %arg7[%c0_154, %c4_155, %c0_156, %c0_157], %166 {strides = array<i32>} : memref<1x8x8x8xf32, #tpu.memory_space<vmem>>, vector<1x1x8x8xf32>,
    %c0_158 = arith.constant 0 : index
    %c0_159 = arith.constant 0 : index
    %c0_160 = arith.constant 0 : index
    %c0_161 = arith.constant 0 : index
    %167 = vector.load %arg2[%c0_158, %c0_159, %c0_160, %c0_161] : memref<1x4x16x16xf32, #tpu.memory_space<vmem>>, vector<1x1x16x16xf32>
    %168 = vector.shape_cast %167 : vector<1x1x16x16xf32> to vector<16x16xf32>
    %c0_162 = arith.constant 0 : index
    %c5 = arith.constant 5 : index
    %169 = memref.load %arg3[%c0_162, %c5] : memref<4x8xf32, #tpu.memory_space<smem>>
    %170 = vector.broadcast %169 : f32 to vector<16x16xf32>
    %171 = arith.mulf %168, %170 : vector<16x16xf32>
    %c0_163 = arith.constant 0 : index
    %c1_164 = arith.constant 1 : index
    %c0_165 = arith.constant 0 : index
    %c0_166 = arith.constant 0 : index
    %172 = vector.load %arg2[%c0_163, %c1_164, %c0_165, %c0_166] : memref<1x4x16x16xf32, #tpu.memory_space<vmem>>, vector<1x1x16x16xf32>
    %173 = vector.shape_cast %172 : vector<1x1x16x16xf32> to vector<16x16xf32>
    %c1_167 = arith.constant 1 : index
    %c5_168 = arith.constant 5 : index
    %174 = memref.load %arg3[%c1_167, %c5_168] : memref<4x8xf32, #tpu.memory_space<smem>>
    %175 = vector.broadcast %174 : f32 to vector<16x16xf32>
    %176 = arith.mulf %173, %175 : vector<16x16xf32>
    %177 = arith.addf %171, %176 : vector<16x16xf32>
    %c0_169 = arith.constant 0 : index
    %c2_170 = arith.constant 2 : index
    %c0_171 = arith.constant 0 : index
    %c0_172 = arith.constant 0 : index
    %178 = vector.load %arg2[%c0_169, %c2_170, %c0_171, %c0_172] : memref<1x4x16x16xf32, #tpu.memory_space<vmem>>, vector<1x1x16x16xf32>
    %179 = vector.shape_cast %178 : vector<1x1x16x16xf32> to vector<16x16xf32>
    %c2_173 = arith.constant 2 : index
    %c5_174 = arith.constant 5 : index
    %180 = memref.load %arg3[%c2_173, %c5_174] : memref<4x8xf32, #tpu.memory_space<smem>>
    %181 = vector.broadcast %180 : f32 to vector<16x16xf32>
    %182 = arith.mulf %179, %181 : vector<16x16xf32>
    %183 = arith.addf %177, %182 : vector<16x16xf32>
    %c0_175 = arith.constant 0 : index
    %c3_176 = arith.constant 3 : index
    %c0_177 = arith.constant 0 : index
    %c0_178 = arith.constant 0 : index
    %184 = vector.load %arg2[%c0_175, %c3_176, %c0_177, %c0_178] : memref<1x4x16x16xf32, #tpu.memory_space<vmem>>, vector<1x1x16x16xf32>
    %185 = vector.shape_cast %184 : vector<1x1x16x16xf32> to vector<16x16xf32>
    %c3_179 = arith.constant 3 : index
    %c5_180 = arith.constant 5 : index
    %186 = memref.load %arg3[%c3_179, %c5_180] : memref<4x8xf32, #tpu.memory_space<smem>>
    %187 = vector.broadcast %186 : f32 to vector<16x16xf32>
    %188 = arith.mulf %185, %187 : vector<16x16xf32>
    %189 = arith.addf %183, %188 : vector<16x16xf32>
    %c5_181 = arith.constant 5 : index
    %190 = memref.load %arg4[%c5_181] : memref<8xf32, #tpu.memory_space<smem>>
    %191 = vector.broadcast %190 : f32 to vector<16x16xf32>
    %192 = arith.addf %189, %191 : vector<16x16xf32>
    %cst_182 = arith.constant 0.000000e+00 : f32
    %193 = vector.broadcast %cst_182 : f32 to vector<16x16xf32>
    %194 = arith.maximumf %192, %193 : vector<16x16xf32>
    %cst_183 = arith.constant dense<0.000000e+00> : vector<8x16xf32>
    %195 = tpu.matmul %0, %194, %cst_183 {dimension_numbers = #tpu.dot_dimension_numbers<[1], [0], [0], [1], [0, 0, 1, 1], [], []>} : vector<8x16xf32>, vector<16x16xf32>, vector<8x16xf32> -> vector<8x16xf32>
    %cst_184 = arith.constant dense<0.000000e+00> : vector<8x8xf32>
    %196 = tpu.matmul %195, %1, %cst_184 {dimension_numbers = #tpu.dot_dimension_numbers<[1], [0], [0], [1], [0, 0, 1, 1], [], []>} : vector<8x16xf32>, vector<16x8xf32>, vector<8x8xf32> -> vector<8x8xf32>
    %c0_185 = arith.constant 0 : index
    %c5_186 = arith.constant 5 : index
    %c0_187 = arith.constant 0 : index
    %c0_188 = arith.constant 0 : index
    %197 = vector.load %arg7[%c0_185, %c5_186, %c0_187, %c0_188] : memref<1x8x8x8xf32, #tpu.memory_space<vmem>>, vector<1x1x8x8xf32>
    %198 = vector.shape_cast %197 : vector<1x1x8x8xf32> to vector<8x8xf32>
    %199 = vector.shape_cast %196 : vector<8x8xf32> to vector<1x1x8x8xf32>
    tpu.vector_store %arg7[%c0_185, %c5_186, %c0_187, %c0_188], %199 {strides = array<i32>} : memref<1x8x8x8xf32, #tpu.memory_space<vmem>>, vector<1x1x8x8xf32>,
    %c0_189 = arith.constant 0 : index
    %c0_190 = arith.constant 0 : index
    %c0_191 = arith.constant 0 : index
    %c0_192 = arith.constant 0 : index
    %200 = vector.load %arg2[%c0_189, %c0_190, %c0_191, %c0_192] : memref<1x4x16x16xf32, #tpu.memory_space<vmem>>, vector<1x1x16x16xf32>
    %201 = vector.shape_cast %200 : vector<1x1x16x16xf32> to vector<16x16xf32>
    %c0_193 = arith.constant 0 : index
    %c6 = arith.constant 6 : index
    %202 = memref.load %arg3[%c0_193, %c6] : memref<4x8xf32, #tpu.memory_space<smem>>
    %203 = vector.broadcast %202 : f32 to vector<16x16xf32>
    %204 = arith.mulf %201, %203 : vector<16x16xf32>
    %c0_194 = arith.constant 0 : index
    %c1_195 = arith.constant 1 : index
    %c0_196 = arith.constant 0 : index
    %c0_197 = arith.constant 0 : index
    %205 = vector.load %arg2[%c0_194, %c1_195, %c0_196, %c0_197] : memref<1x4x16x16xf32, #tpu.memory_space<vmem>>, vector<1x1x16x16xf32>
    %206 = vector.shape_cast %205 : vector<1x1x16x16xf32> to vector<16x16xf32>
    %c1_198 = arith.constant 1 : index
    %c6_199 = arith.constant 6 : index
    %207 = memref.load %arg3[%c1_198, %c6_199] : memref<4x8xf32, #tpu.memory_space<smem>>
    %208 = vector.broadcast %207 : f32 to vector<16x16xf32>
    %209 = arith.mulf %206, %208 : vector<16x16xf32>
    %210 = arith.addf %204, %209 : vector<16x16xf32>
    %c0_200 = arith.constant 0 : index
    %c2_201 = arith.constant 2 : index
    %c0_202 = arith.constant 0 : index
    %c0_203 = arith.constant 0 : index
    %211 = vector.load %arg2[%c0_200, %c2_201, %c0_202, %c0_203] : memref<1x4x16x16xf32, #tpu.memory_space<vmem>>, vector<1x1x16x16xf32>
    %212 = vector.shape_cast %211 : vector<1x1x16x16xf32> to vector<16x16xf32>
    %c2_204 = arith.constant 2 : index
    %c6_205 = arith.constant 6 : index
    %213 = memref.load %arg3[%c2_204, %c6_205] : memref<4x8xf32, #tpu.memory_space<smem>>
    %214 = vector.broadcast %213 : f32 to vector<16x16xf32>
    %215 = arith.mulf %212, %214 : vector<16x16xf32>
    %216 = arith.addf %210, %215 : vector<16x16xf32>
    %c0_206 = arith.constant 0 : index
    %c3_207 = arith.constant 3 : index
    %c0_208 = arith.constant 0 : index
    %c0_209 = arith.constant 0 : index
    %217 = vector.load %arg2[%c0_206, %c3_207, %c0_208, %c0_209] : memref<1x4x16x16xf32, #tpu.memory_space<vmem>>, vector<1x1x16x16xf32>
    %218 = vector.shape_cast %217 : vector<1x1x16x16xf32> to vector<16x16xf32>
    %c3_210 = arith.constant 3 : index
    %c6_211 = arith.constant 6 : index
    %219 = memref.load %arg3[%c3_210, %c6_211] : memref<4x8xf32, #tpu.memory_space<smem>>
    %220 = vector.broadcast %219 : f32 to vector<16x16xf32>
    %221 = arith.mulf %218, %220 : vector<16x16xf32>
    %222 = arith.addf %216, %221 : vector<16x16xf32>
    %c6_212 = arith.constant 6 : index
    %223 = memref.load %arg4[%c6_212] : memref<8xf32, #tpu.memory_space<smem>>
    %224 = vector.broadcast %223 : f32 to vector<16x16xf32>
    %225 = arith.addf %222, %224 : vector<16x16xf32>
    %cst_213 = arith.constant 0.000000e+00 : f32
    %226 = vector.broadcast %cst_213 : f32 to vector<16x16xf32>
    %227 = arith.maximumf %225, %226 : vector<16x16xf32>
    %cst_214 = arith.constant dense<0.000000e+00> : vector<8x16xf32>
    %228 = tpu.matmul %0, %227, %cst_214 {dimension_numbers = #tpu.dot_dimension_numbers<[1], [0], [0], [1], [0, 0, 1, 1], [], []>} : vector<8x16xf32>, vector<16x16xf32>, vector<8x16xf32> -> vector<8x16xf32>
    %cst_215 = arith.constant dense<0.000000e+00> : vector<8x8xf32>
    %229 = tpu.matmul %228, %1, %cst_215 {dimension_numbers = #tpu.dot_dimension_numbers<[1], [0], [0], [1], [0, 0, 1, 1], [], []>} : vector<8x16xf32>, vector<16x8xf32>, vector<8x8xf32> -> vector<8x8xf32>
    %c0_216 = arith.constant 0 : index
    %c6_217 = arith.constant 6 : index
    %c0_218 = arith.constant 0 : index
    %c0_219 = arith.constant 0 : index
    %230 = vector.load %arg7[%c0_216, %c6_217, %c0_218, %c0_219] : memref<1x8x8x8xf32, #tpu.memory_space<vmem>>, vector<1x1x8x8xf32>
    %231 = vector.shape_cast %230 : vector<1x1x8x8xf32> to vector<8x8xf32>
    %232 = vector.shape_cast %229 : vector<8x8xf32> to vector<1x1x8x8xf32>
    tpu.vector_store %arg7[%c0_216, %c6_217, %c0_218, %c0_219], %232 {strides = array<i32>} : memref<1x8x8x8xf32, #tpu.memory_space<vmem>>, vector<1x1x8x8xf32>,
    %c0_220 = arith.constant 0 : index
    %c0_221 = arith.constant 0 : index
    %c0_222 = arith.constant 0 : index
    %c0_223 = arith.constant 0 : index
    %233 = vector.load %arg2[%c0_220, %c0_221, %c0_222, %c0_223] : memref<1x4x16x16xf32, #tpu.memory_space<vmem>>, vector<1x1x16x16xf32>
    %234 = vector.shape_cast %233 : vector<1x1x16x16xf32> to vector<16x16xf32>
    %c0_224 = arith.constant 0 : index
    %c7 = arith.constant 7 : index
    %235 = memref.load %arg3[%c0_224, %c7] : memref<4x8xf32, #tpu.memory_space<smem>>
    %236 = vector.broadcast %235 : f32 to vector<16x16xf32>
    %237 = arith.mulf %234, %236 : vector<16x16xf32>
    %c0_225 = arith.constant 0 : index
    %c1_226 = arith.constant 1 : index
    %c0_227 = arith.constant 0 : index
    %c0_228 = arith.constant 0 : index
    %238 = vector.load %arg2[%c0_225, %c1_226, %c0_227, %c0_228] : memref<1x4x16x16xf32, #tpu.memory_space<vmem>>, vector<1x1x16x16xf32>
    %239 = vector.shape_cast %238 : vector<1x1x16x16xf32> to vector<16x16xf32>
    %c1_229 = arith.constant 1 : index
    %c7_230 = arith.constant 7 : index
    %240 = memref.load %arg3[%c1_229, %c7_230] : memref<4x8xf32, #tpu.memory_space<smem>>
    %241 = vector.broadcast %240 : f32 to vector<16x16xf32>
    %242 = arith.mulf %239, %241 : vector<16x16xf32>
    %243 = arith.addf %237, %242 : vector<16x16xf32>
    %c0_231 = arith.constant 0 : index
    %c2_232 = arith.constant 2 : index
    %c0_233 = arith.constant 0 : index
    %c0_234 = arith.constant 0 : index
    %244 = vector.load %arg2[%c0_231, %c2_232, %c0_233, %c0_234] : memref<1x4x16x16xf32, #tpu.memory_space<vmem>>, vector<1x1x16x16xf32>
    %245 = vector.shape_cast %244 : vector<1x1x16x16xf32> to vector<16x16xf32>
    %c2_235 = arith.constant 2 : index
    %c7_236 = arith.constant 7 : index
    %246 = memref.load %arg3[%c2_235, %c7_236] : memref<4x8xf32, #tpu.memory_space<smem>>
    %247 = vector.broadcast %246 : f32 to vector<16x16xf32>
    %248 = arith.mulf %245, %247 : vector<16x16xf32>
    %249 = arith.addf %243, %248 : vector<16x16xf32>
    %c0_237 = arith.constant 0 : index
    %c3_238 = arith.constant 3 : index
    %c0_239 = arith.constant 0 : index
    %c0_240 = arith.constant 0 : index
    %250 = vector.load %arg2[%c0_237, %c3_238, %c0_239, %c0_240] : memref<1x4x16x16xf32, #tpu.memory_space<vmem>>, vector<1x1x16x16xf32>
    %251 = vector.shape_cast %250 : vector<1x1x16x16xf32> to vector<16x16xf32>
    %c3_241 = arith.constant 3 : index
    %c7_242 = arith.constant 7 : index
    %252 = memref.load %arg3[%c3_241, %c7_242] : memref<4x8xf32, #tpu.memory_space<smem>>
    %253 = vector.broadcast %252 : f32 to vector<16x16xf32>
    %254 = arith.mulf %251, %253 : vector<16x16xf32>
    %255 = arith.addf %249, %254 : vector<16x16xf32>
    %c7_243 = arith.constant 7 : index
    %256 = memref.load %arg4[%c7_243] : memref<8xf32, #tpu.memory_space<smem>>
    %257 = vector.broadcast %256 : f32 to vector<16x16xf32>
    %258 = arith.addf %255, %257 : vector<16x16xf32>
    %cst_244 = arith.constant 0.000000e+00 : f32
    %259 = vector.broadcast %cst_244 : f32 to vector<16x16xf32>
    %260 = arith.maximumf %258, %259 : vector<16x16xf32>
    %cst_245 = arith.constant dense<0.000000e+00> : vector<8x16xf32>
    %261 = tpu.matmul %0, %260, %cst_245 {dimension_numbers = #tpu.dot_dimension_numbers<[1], [0], [0], [1], [0, 0, 1, 1], [], []>} : vector<8x16xf32>, vector<16x16xf32>, vector<8x16xf32> -> vector<8x16xf32>
    %cst_246 = arith.constant dense<0.000000e+00> : vector<8x8xf32>
    %262 = tpu.matmul %261, %1, %cst_246 {dimension_numbers = #tpu.dot_dimension_numbers<[1], [0], [0], [1], [0, 0, 1, 1], [], []>} : vector<8x16xf32>, vector<16x8xf32>, vector<8x8xf32> -> vector<8x8xf32>
    %c0_247 = arith.constant 0 : index
    %c7_248 = arith.constant 7 : index
    %c0_249 = arith.constant 0 : index
    %c0_250 = arith.constant 0 : index
    %263 = vector.load %arg7[%c0_247, %c7_248, %c0_249, %c0_250] : memref<1x8x8x8xf32, #tpu.memory_space<vmem>>, vector<1x1x8x8xf32>
    %264 = vector.shape_cast %263 : vector<1x1x8x8xf32> to vector<8x8xf32>
    %265 = vector.shape_cast %262 : vector<8x8xf32> to vector<1x1x8x8xf32>
    tpu.vector_store %arg7[%c0_247, %c7_248, %c0_249, %c0_250], %265 {strides = array<i32>} : memref<1x8x8x8xf32, #tpu.memory_space<vmem>>, vector<1x1x8x8xf32>,
    return
  }
  func.func @transform_0(%arg0: i32, %arg1: i32) -> (i32, i32, i32, i32) {
    %c0_i32 = arith.constant 0 : i32
    %c0_i32_0 = arith.constant 0 : i32
    %c0_i32_1 = arith.constant 0 : i32
    return %arg0, %c0_i32, %arg1, %c0_i32_0 : i32, i32, i32, i32
  }
  func.func @transform_1(%arg0: i32, %arg1: i32) -> (i32, i32) {
    %c0_i32 = arith.constant 0 : i32
    %c0_i32_0 = arith.constant 0 : i32
    %c0_i32_1 = arith.constant 0 : i32
    return %c0_i32, %c0_i32_0 : i32, i32
  }
  func.func @transform_2(%arg0: i32, %arg1: i32) -> i32 {
    %c0_i32 = arith.constant 0 : i32
    %c0_i32_0 = arith.constant 0 : i32
    return %c0_i32 : i32
  }
  func.func @transform_3(%arg0: i32, %arg1: i32) -> (i32, i32) {
    %c0_i32 = arith.constant 0 : i32
    %c0_i32_0 = arith.constant 0 : i32
    %c0_i32_1 = arith.constant 0 : i32
    return %c0_i32, %c0_i32_0 : i32, i32
  }
  func.func @transform_4(%arg0: i32, %arg1: i32) -> (i32, i32) {
    %c0_i32 = arith.constant 0 : i32
    %c0_i32_0 = arith.constant 0 : i32
    %c0_i32_1 = arith.constant 0 : i32
    return %c0_i32, %c0_i32_0 : i32, i32
  }
  func.func @transform_5(%arg0: i32, %arg1: i32) -> (i32, i32, i32, i32) {
    %c0_i32 = arith.constant 0 : i32
    %c0_i32_0 = arith.constant 0 : i32
    %c0_i32_1 = arith.constant 0 : i32
    return %arg0, %c0_i32, %arg1, %c0_i32_0 : i32, i32, i32, i32
  }
}

</mosaic_0001>

<bundles_post_ra>
// kernel: tpu_custom_call.1
= control target key start
LH: loop header
LB: loop body
LE: loop exit
PB: predicated region body
PF: predicated region fallthrough
CT: control target
= control target key end

     0   :  { %s3018_s0 = inlined_call_operand.hbm [shape: f32[2,4,16,16], index: 0, kind: input, shape index: {}]   ;;  %s3019_s1 = inlined_call_operand.vmem [shape: f32[4,8], index: 1, kind: input, shape index: {}]   ;;  %s3020_s2 = inlined_call_operand.vmem [shape: f32[8], index: 2, kind: input, shape index: {}]   ;;  %s3021_s3 = inlined_call_operand.vmem [shape: f32[8,16], index: 3, kind: input, shape index: {}]   ;;  %s3022_s4 = inlined_call_operand.vmem [shape: f32[16,8], index: 4, kind: input, shape index: {}]   ;;  %s3023_s5 = inlined_call_operand.hbm [shape: f32[2,8,8,8], index: 5, kind: output, shape index: {}]  }
   0x1   :  { %3030 = sst [smem:[#allocation14_spill]] %s3019_s1 }
   0x2   :  { %10 = vsyncpa [#allocation3], 0 }
   0x3   :  { %12 = vsyncpa [#allocation3 + $0x1], 0 }
   0x4   :  { %13 = vsyncpa [#allocation5], 0 }
   0x5   :  { %14 = vsyncpa [#allocation8], 0 }
   0x6   :  { %15 = vsyncpa [#allocation4], 0 }
   0x7   :  { %17 = vsyncpa [#allocation4 + $0x1], 0  ;;  %s2491_s18 = smov 0   ;;  %s2493_s19 = smov 0  }
   0x8   :  { %s2495_s20 = smov 0   ;;  %s2497_s21 = smov 0  }
   0x9   :  { %s2499_s22 = smov 0   ;;  %s2501_s23 = smov 0  }
   0xa LB: > { %s1870_s24 = sadd.s32 4294967295, %s2448_s23   ;;  %s1871_s25 = sadd.s32 4294967294, %s2448_s23   ;;  %s2448_s23 = sphi %s2501_s23, %s23_s23   ;;  %s2444_s22 = sphi %s2499_s22, %s3051_s22   ;;  %s2440_s21 = sphi %s2497_s21, %s3050_s21   ;;  %s2436_s20 = sphi %s2495_s20, %s3049_s20   ;;  %s2432_s19 = sphi %s2493_s19, %s3048_s19   ;;  %s2428_s18 = sphi %s2491_s18, %s3047_s18  }
   0xb   : > { %s44_s26 = sadd.s32 1, %s2436_s20  ;;  %p51_p0 = scmp.ne.s32.totalorder %s2436_s20, %s2432_s19 }
   0xc   : > { %p52_p1 = scmp.eq.s32.totalorder %s2448_s23, 0  ;;  %p57_p2 = scmp.ne.s32.totalorder %s2432_s19, %s2428_s18 }
   0xd   : > { %p2529_p3 = scmp.eq.s32.totalorder %s1870_s24, 0  ;;  %p167_p4 = scmp.eq.s32.totalorder %s1870_s24, 1 }
   0xe   : > { %p2533_p5 = por %p52_p1, %p51_p0  ;;  %p173_p6 = scmp.eq.s32.totalorder %s1871_s25, 1 }
   0xf   : > { %s3031_s27 = scalar_select %p2529_p3, 1, 0 }
  0x10   : > { %p2539_p7 = por %p2529_p3, %p57_p2  ;;  %p2543_p8 = por %p167_p4, %p51_p0 }
  0x11   : > { %p2547_p9 = por %p173_p6, %p57_p2  ;;  %p1872_p10 = scmp.ge.s32.totalorder %s2448_s23, 1 }
  0x12   : > { %s3033_s29 = scalar_select %p2539_p7, 1, 0 }
  0x13   : > { %s3034_s30 = scalar_select %p2543_p8, 1, 0 }
  0x14   : > { %s3035_s6 = scalar_select %p2547_p9, 1, 0 }
  0x15   : > { %p180_p11 = scmp.lt.s32.totalorder %s2448_s23, 3  ;;  %s3036_s1 = sld [smem:[#allocation14_spill]] }
  0x16   : > { %p2237_p0 = scmp.lt.s32.totalorder %s2448_s23, 2  ;;  %s204_s13 = sshll.u32 %s3020_s2, 4  ;;  %s205_s13 = int_to_ptr.vmem [resolvable:$true] %s204_s13 }
  0x17   : > { %p2556_p12 = pnand %p1872_p10, %p180_p11 }
  0x18   : > { %p2569_p2 = pnand %p2237_p0, %p2533_p5 }
  0x19   : > { %s3037_s10 = scalar_select %p2556_p12, 1, 0 }
  0x1a   : > { %p2220_p1 = pneg %p2556_p12 }
  0x1b   : > { %s193_s9 = sshll.u32 %s3036_s1, 4  ;;  %s194_s9 = int_to_ptr.vmem [resolvable:$true] %s193_s9 }
  0x1c   : > { %s3038_s14 = scalar_select %p2569_p2, 1, 0 }
  0x1d   : > { %p2575_p4 = pnand %p2220_p1, %p2529_p3  ;;  %s2298_s16 = scalar_lea.vmem %s194_s9, 64 }
  0x1e   : > { %p2299_p6 = scmp.ne.s32.totalorder %s194_s9, %s2298_s16  ;;  %p2306_p9 = scmp.lt.s32.totalorder %s194_s9, %s194_s9 }
  0x1f   : > { %p2300_p10 = pneg %p2575_p4  ;;  %p2307_p8 = scmp.lt.s32.totalorder %s2298_s16, %s2298_s16 }
  0x21   : > { %p2301_p11 = pnand %p2300_p10, %p2299_p6  ;;  %p2308_p7 = por %p2307_p8, %p2306_p9 }
  0x23   : > { %p2302_p13 = pneg %p2301_p11 }
  0x25   : > { %p2309_p5 = pnand %p2308_p7, %p2302_p13 }
  0x27   : > { %2312 = shalt.err (!%p2309_p5)
}
  0x28   : > { %s2450_s17 = smov [#allocation6]   ;;  %s2313_s24 = scalar_lea.vmem %s205_s13, 16 }
  0x29   : > { %2223 = dma.vmem_to_smem (!%p2575_p4), %s194_s9, 64, %s2450_s17, [#allocation5]  }
  0x2a   : > { %p2314_p0 = scmp.ne.s32.totalorder %s205_s13, %s2313_s24  ;;  %p2321_p12 = scmp.lt.s32.totalorder %s205_s13, %s205_s13 }
  0x2b   : > { %p2322_p2 = scmp.lt.s32.totalorder %s2313_s24, %s2313_s24 }
  0x2c   : > { %p2316_p1 = pnand %p2314_p0, %p2300_p10 }
  0x2d   : > { %p2323_p6 = por %p2322_p2, %p2321_p12 }
  0x2e   : > { %p2317_p3 = pneg %p2316_p1 }
  0x30   : > { %p2324_p11 = pnand %p2323_p6, %p2317_p3 }
  0x32   : > { %2327 = shalt.err (!%p2324_p11)
}
  0x33   : > { %s2451_s25 = smov [#allocation7]   ;;  %s35_s28 = sadd.s32 1, %s2444_s22 }
  0x34   : > { %2226 = dma.vmem_to_smem (!%p2575_p4), %s205_s13, 16, %s2451_s25, [#allocation8]  }
  0x35   : > { %s221_s7 = sand.u32 1, %s2436_s20   ;;  %p37_p7 = scmp.ge.s32.totalorder %s35_s28, 2 }
  0x36   : > { %s1876_s8 = sshll.u32 %s221_s7, 6  ;;  %s1998_s9 = sshll.u32 %s2444_s22, 10 }
  0x37   : > { %s3053_s28 = smov (%p37_p7, %s35_s28), 0  ;;  %s2593_s15 = scalar_lea.hbm %s3018_s0, %s1998_s9 }
  0x38   : > { %s39_s16 = ssub.s32 %s2444_s22, %s3053_s28  ;;  %s225_s13 = scalar_lea.vmem [#allocation2], %s1876_s8 }
  0x39   : > { %s234_s17 = sshll.u32 %s225_s13, 4  ;;  %p42_p3 = scmp.eq.s32.totalorder %s39_s16, 0  ;;  %s2597_s17 = int_to_ptr.vmem [resolvable:$true] %s234_s17 }
  0x3a   : > { %s2604_s25 = scalar_lea.sflag [#allocation3], %s221_s7  ;;  %s2328_s1 = scalar_lea.hbm %s2593_s15, 1024 }
  0x3b   : > { %s2602_s24 = scalar_select %p42_p3, %s2436_s20, %s44_s26  }
  0x3c   : > { %p2329_p8 = scmp.ne.s32.totalorder %s2593_s15, %s2328_s1  ;;  %p3040_p9 = scmp.ne.s32.totalorder %s3038_s14, 0 }
  0x3d   : > { %s2333_s8 = scalar_lea.hbm %s3018_s0, 2048  ;;  %p2334_p4 = scmp.lt.u32.totalorder %s2593_s15, %s3018_s0 }
  0x3e   : > { %p2330_p12 = pneg %p3040_p9  ;;  %p2335_p10 = scmp.lt.u32.totalorder %s2333_s8, %s2328_s1 }
  0x3f   : > { %p2337_p0 = scmp.lt.u32.totalorder %s2328_s1, %s2593_s15 }
  0x40   : > { %p2331_p13 = pnand %p2330_p12, %p2329_p8  ;;  %p2336_p5 = por %p2335_p10, %p2334_p4 }
  0x42   : > { %p2332_p2 = pneg %p2331_p13  ;;  %p2338_p1 = por %p2337_p0, %p2336_p5 }
  0x44   : > { %p2339_p6 = pnand %p2338_p1, %p2332_p2 }
  0x46   : > { %2342 = shalt.err (!%p2339_p6)
}
  0x47   : > { %s2343_s26 = scalar_lea.vmem %s2597_s17, 1024  ;;  %s2452_s7 = smov [#allocation2]  }
  0x48   : > { %p2344_p11 = scmp.ne.s32.totalorder %s2597_s17, %s2343_s26  ;;  %s2348_s13 = sshll.u32 %s2452_s7, 4  ;;  %s2349_s13 = int_to_ptr.vmem [resolvable:$false] %s2348_s13 }
  0x49   : > { %s2350_s9 = scalar_lea.vmem %s2349_s13, 2048  ;;  %p2351_p8 = scmp.lt.s32.totalorder %s2597_s17, %s2349_s13 }
  0x4a   : > { %p2346_p7 = pnand %p2344_p11, %p2330_p12  ;;  %p2352_p13 = scmp.lt.s32.totalorder %s2350_s9, %s2343_s26 }
  0x4c   : > { %p2347_p3 = pneg %p2346_p7  ;;  %p2353_p4 = por %p2352_p13, %p2351_p8 }
  0x4e   : > { %p2354_p10 = pnand %p2353_p4, %p2347_p3 }
  0x50   : > { %2357 = shalt.err (!%p2354_p10)
}
  0x51   : > { %s2453_s1 = smov 128   ;;  %s2454_s11 = smov 8  }
  0x52   : > { %2230 = dma.hbm_to_vmem [thread:$0]  (!%p3040_p9), %s2593_s15, 1024, %s2597_s17, %s2604_s25, %s2453_s1, %s2453_s1, %s2454_s11  }
  0x53   : > { %p3041_p12 = scmp.ne.s32.totalorder %s3037_s10, 0 }
  0x54   : > { %s2635_s8 = sand.u32 (!%p3041_p12), 1, %s2432_s19   ;;  %p3042_p2 = scmp.ne.s32.totalorder (!%p3041_p12), %s3033_s29, 0 }
  0x55   : > { %246 = sbr.rel (%p3041_p12) target bundleno = 604 (0x25c), region = 40  ;;  %s1880_s12 = sshll.u32 (!%p3041_p12), %s2635_s8, 6 }
  0x56   : > { %s249_s16 = scalar_lea.sflag (!%p3041_p12), [#allocation3], %s2635_s8  ;;  %s2641_s26 = scalar_lea.vmem (!%p3041_p12), [#allocation2], %s1880_s12 }
  0x5c   : > { %2411 = dma.done.wait (%p3042_p2), %s249_s16, 1024  }
  0x5d   : > { %2413 = vsyncadd (%p3042_p2), %s249_s16, 4294966272  ;;  %p3043_p9 = scmp.ne.s32.totalorder %s3031_s27, 0 }
  0x5f   : > { %2415 = dma.done.wait (%p3043_p9), [#allocation5], 64  }
  0x60   : > { %2417 = vsyncadd (%p3043_p9), [#allocation5], 4294967232 }
  0x61   : > { %2419 = dma.done.wait (%p3043_p9), [#allocation8], 16  }
  0x62   : > { %2421 = vsyncadd (%p3043_p9), [#allocation8], 4294967280 }
  0x63   : > { %265 = sfence }
  0x64   : > { %s294_s10 = sld [smem:[#allocation6]]  ;;  %v2455_v0 = vmov 0.0|0.0   ;;  %v2664_v1 = vld [vmem:[%s2641_s26] sm:$0xff]  ;;  %v2667_v2 = vld [vmem:[%s2641_s26 + $0x8] sm:$0xff]  ;;  %v2675_v4 = vld [vmem:[%s2641_s26 + $0x10] sm:$0xff]  ;;  %vm2456_vm0 = vmmov 0  }
  0x65   : > { %2160 = vmatprep.subr.bf16.mxu0 %v2455_v0  ;;  %s2656_s29 = sld [smem:[#allocation6 + $0x80]]  ;;  %2163 = vmatprep.subr.bf16.mxu1 %v2455_v0  ;;  %v290_v3 = vld [vmem:[%s3022_s4] sm:$0xff]  ;;  %v2457_v5 = vmov 0.0   ;;  %s2679_s7 = sld [smem:[#allocation6 + $0x1]]  ;;  %v291_v6 = vld [vmem:[%s3022_s4 + $0x8] sm:$0xff]  ;;  %v2689_v7 = vld [vmem:[%s2641_s26 + $0x18] sm:$0xff] }
  0x66   : > { %s2659_s14 = sld [smem:[#allocation6 + $0x100]]  ;;  %2052 = vmatprep.mubr.msk.f32.mxu0 %vm2456_vm0, %v2457_v5  ;;  %s2681_s13 = sld [smem:[#allocation6 + $0x81]]  ;;  %2059 = vmatprep.mubr.msk.f32.mxu1 %vm2456_vm0, %v2457_v5  ;;  %v2692_v8 = vld [vmem:[%s2641_s26 + $0x20] sm:$0xff]  ;;  %v2698_v9 = vpack.c.bf16 %v291_v6, %v290_v3  ;;  %v2701_v11 = vld [vmem:[%s2641_s26 + $0x28] sm:$0xff]  ;;  %v2704_v12 = vld [vmem:[%s2641_s26 + $0x30] sm:$0xff]  ;;  %vm331_vm1 = vcmask 130048  }
  0x67   : > { %s2661_s15 = sld [smem:[#allocation6 + $0x180]]  ;;  %s2694_s11 = sld [smem:[#allocation6 + $0x101]]  ;;  %v2707_v13 = vld [vmem:[%s2641_s26 + $0x38] sm:$0xff]  ;;  %vm478_vm2 = vcmask 64512  }
  0x68   : > { %s2669_s27 = sld [smem:[#allocation7]]  ;;  %s2696_s16 = sld [smem:[#allocation6 + $0x181]]  ;;  %2165 = vmatpush3.bf16.msra.mxu1 %v2698_v9 }
  0x69   : > { %s2709_s17 = sld [smem:[#allocation7 + $0x1]]  ;;  %s2714_s25 = sld [smem:[#allocation6 + $0x2]]  ;;  %2169 = vmatprep.subr.bf16.mxu1 %v2455_v0 }
  0x6a   : > { %v295_v10 = vstv %s294_s10  ;;  %s2716_s9 = sld [smem:[#allocation6 + $0x82]]  ;;  %s2764_s1 = sld [smem:[#allocation6 + $0x4]] }
  0x6b   : > { %v296_v14 = vmul.f32 %v295_v10, %v2664_v1  ;;  %v297_v15 = vmul.f32 %v295_v10, %v2667_v2  ;;  %v302_v16 = vstv %s2656_s29  ;;  %v483_v28 = vstv %s2679_s7  ;;  %s2734_s26 = sld [smem:[#allocation6 + $0x102]]  ;;  %s2760_s7 = sld [smem:[#allocation6 + $0x183]] }
  0x6c   : > { %v303_v17 = vmul.f32 %v2675_v4, %v302_v16  ;;  %v304_v18 = vmul.f32 %v2689_v7, %v302_v16  ;;  %v311_v19 = vstv %s2659_s14  ;;  %v484_v29 = vmul.f32 %v483_v28, %v2664_v1  ;;  %s2736_s10 = sld [smem:[#allocation6 + $0x182]]  ;;  %s2746_s14 = sld [smem:[#allocation6 + $0x3]]  ;;  %v2772_v16 = vld [vmem:[%s3021_s3] sm:$0xff] }
  0x6d   : > { %v320_v20 = vstv %s2661_s15  ;;  %v312_v21 = vmul.f32 %v2692_v8, %v311_v19  ;;  %v313_v22 = vmul.f32 %v2701_v11, %v311_v19  ;;  %v485_v30 = vmul.f32 %v483_v28, %v2667_v2  ;;  %s2744_s29 = sld [smem:[#allocation7 + $0x2]]  ;;  %s2752_s15 = sld [smem:[#allocation6 + $0x83]] }
  0x6e   : > { %v321_v23 = vmul.f32 %v2704_v12, %v320_v20  ;;  %v322_v24 = vmul.f32 %v2707_v13, %v320_v20  ;;  %v305_v25 = vadd.f32 %v303_v17, %v296_v14  ;;  %v306_v26 = vadd.f32 %v304_v18, %v297_v15  ;;  %p3044_p0 = scmp.ne.s32.totalorder %s3034_s30, 0 }
  0x6f   : > { %v326_v27 = vstv %s2669_s27  ;;  %v489_v31 = vstv %s2681_s13  ;;  %v497_v32 = vstv %s2694_s11  ;;  %v505_v39 = vstv %s2696_s16  ;;  %s2754_s27 = sld [smem:[#allocation6 + $0x103]]  ;;  %s2847_s11 = sld [smem:[#allocation6 + $0x186]] }
  0x70   : > { %v314_v33 = vadd.f32 %v312_v21, %v305_v25  ;;  %v315_v34 = vadd.f32 %v313_v22, %v306_v26  ;;  %v490_v35 = vmul.f32 %v2675_v4, %v489_v31  ;;  %v491_v36 = vmul.f32 %v2689_v7, %v489_v31  ;;  %s2762_s13 = sld [smem:[#allocation7 + $0x3]]  ;;  %s2849_s16 = sld [smem:[#allocation7 + $0x6]] }
  0x71   : > { %v498_v37 = vmul.f32 %v2692_v8, %v497_v32  ;;  %v499_v38 = vmul.f32 %v2701_v11, %v497_v32  ;;  %v511_v40 = vstv %s2709_s17  ;;  %v506_v45 = vmul.f32 %v2704_v12, %v505_v39  ;;  %s2778_s17 = sld [smem:[#allocation6 + $0x84]] }
  0x72   : > { %v323_v41 = vadd.f32 %v321_v23, %v314_v33  ;;  %v324_v42 = vadd.f32 %v322_v24, %v315_v34  ;;  %v492_v43 = vadd.f32 %v490_v35, %v484_v29  ;;  %v493_v44 = vadd.f32 %v491_v36, %v485_v30 }
  0x73   : > { %v507_v46 = vmul.f32 %v2707_v13, %v505_v39  ;;  %v664_v47 = vstv %s2714_s25  ;;  %v670_v48 = vstv %s2716_s9  ;;  %v678_v63 = vstv %s2734_s26  ;;  %s2781_s25 = sld [smem:[#allocation6 + $0x104]] }
  0x74   : > { %v327_v49 = vadd.f32 %v326_v27, %v323_v41  ;;  %v328_v50 = vadd.f32 %v326_v27, %v324_v42  ;;  %v500_v51 = vadd.f32 %v498_v37, %v492_v43  ;;  %v501_v52 = vadd.f32 %v499_v38, %v493_v44  ;;  %s2783_s9 = sld [smem:[#allocation6 + $0x184]] }
  0x75   : > { %v665_v53 = vmul.f32 %v664_v47, %v2664_v1  ;;  %v666_v54 = vmul.f32 %v664_v47, %v2667_v2  ;;  %v671_v55 = vmul.f32 %v2675_v4, %v670_v48  ;;  %v672_v56 = vmul.f32 %v2689_v7, %v670_v48  ;;  %s2796_s26 = sld [smem:[#allocation7 + $0x4]] }
  0x76   : > { %v329_v57 = vmax.f32 %v327_v49, 0.0  ;;  %v330_v58 = vmax.f32 %v328_v50, 0.0  ;;  %v508_v59 = vadd.f32 %v506_v45, %v500_v51  ;;  %v509_v60 = vadd.f32 %v507_v46, %v501_v52 }
  0x77   : > { %v673_v61 = vadd.f32 %v671_v55, %v665_v53  ;;  %v674_v62 = vadd.f32 %v672_v56, %v666_v54  ;;  %v686_v3 = vstv %s2736_s10  ;;  %v679_v15 = vmul.f32 %v2692_v8, %v678_v63  ;;  %s2801_s10 = sld [smem:[#allocation6 + $0x5]] }
  0x78   : > { %v2161_v6 = vpack.c.bf16 %v330_v58, %v329_v57  ;;  %v512_v10 = vadd.f32 %v511_v40, %v508_v59  ;;  %v513_v14 = vadd.f32 %v511_v40, %v509_v60  ;;  %v680_v17 = vmul.f32 %v2701_v11, %v678_v63 }
  0x79   : > { %v687_v18 = vmul.f32 %v2704_v12, %v686_v3  ;;  %v688_v19 = vmul.f32 %v2707_v13, %v686_v3  ;;  %v692_v20 = vstv %s2744_s29  ;;  %v681_v23 = vadd.f32 %v679_v15, %v673_v61  ;;  %s2803_s29 = sld [smem:[#allocation6 + $0x85]] }
  0x7a   : > { %2162 = vmatpush3.bf16.msra.mxu0 %v2161_v6  ;;  %v514_v21 = vmax.f32 %v512_v10, 0.0  ;;  %v515_v22 = vmax.f32 %v513_v14, 0.0  ;;  %v845_v24 = vstv %s2746_s14  ;;  %v682_v25 = vadd.f32 %v680_v17, %v674_v62  ;;  %s2812_s14 = sld [smem:[#allocation6 + $0x105]] }
  0x7b   : > { %2166 = vmatprep.subr.bf16.mxu0 %v2455_v0  ;;  %v846_v26 = vmul.f32 %v845_v24, %v2664_v1  ;;  %v847_v27 = vmul.f32 %v845_v24, %v2667_v2  ;;  %v851_v28 = vstv %s2752_s15  ;;  %v689_v30 = vadd.f32 %v687_v18, %v681_v23  ;;  %s2817_s15 = sld [smem:[#allocation6 + $0x185]] }
  0x7c   : > { %v2167_v29 = vpack.c.bf16 %v515_v22, %v514_v21  ;;  %v852_v31 = vmul.f32 %v2675_v4, %v851_v28  ;;  %v853_v32 = vmul.f32 %v2689_v7, %v851_v28  ;;  %v690_v33 = vadd.f32 %v688_v19, %v682_v25 }
  0x7d   : > { %2053 = vmatmul.mubr.msk.f32.vlgmr.msra.gmra.mrb[0].mxu0 %vm331_vm1, %v2772_v16  ;;  %v859_v34 = vstv %s2754_s27  ;;  %v867_v35 = vstv %s2760_s7  ;;  %v873_v36 = vstv %s2762_s13  ;;  %v693_v37 = vadd.f32 %v692_v20, %v689_v30  ;;  %s2819_s27 = sld [smem:[#allocation7 + $0x5]]  ;;  %s2830_s7 = sld [smem:[#allocation6 + $0x6]] }
  0x7e   : > { %2168 = vmatpush3.bf16.msra.mxu0 %v2167_v29  ;;  %2066 = vmatprep.mubr.msk.f32.mxu0 %vm2456_vm0, %v2457_v5  ;;  %v854_v38 = vadd.f32 %v852_v31, %v846_v26  ;;  %v855_v39 = vadd.f32 %v853_v32, %v847_v27  ;;  %v1026_v40 = vstv %s2764_s1  ;;  %v694_v41 = vadd.f32 %v692_v20, %v690_v33  ;;  %s2832_s13 = sld [smem:[#allocation6 + $0x86]] }
  0x7f   : > { %2172 = vmatprep.subr.bf16.mxu0 %v2455_v0  ;;  %v860_v42 = vmul.f32 %v2692_v8, %v859_v34  ;;  %v861_v43 = vmul.f32 %v2701_v11, %v859_v34  ;;  %v868_v44 = vmul.f32 %v2704_v12, %v867_v35  ;;  %v695_v45 = vmax.f32 %v693_v37, 0.0  ;;  %s2839_s1 = sld [smem:[#allocation6 + $0x106]] }
  0x80   : > { %v869_v46 = vmul.f32 %v2707_v13, %v867_v35  ;;  %v1027_v47 = vmul.f32 %v1026_v40, %v2664_v1  ;;  %v1028_v48 = vmul.f32 %v1026_v40, %v2667_v2  ;;  %v696_v49 = vmax.f32 %v694_v41, 0.0 }
  0x81   : > { %2067 = vmatmul.mubr.msk.f32.vlgmr.msra.gmra.mrb[2].mxu0 %vm331_vm1, %v2772_v16  ;;  %v862_v50 = vadd.f32 %v860_v42, %v854_v38  ;;  %v863_v51 = vadd.f32 %v861_v43, %v855_v39  ;;  %v1032_v52 = vstv %s2778_s17  ;;  %v1040_v55 = vstv %s2781_s25  ;;  %s2856_s17 = sld [smem:[#allocation6 + $0x7]] }
  0x82   : > { %2080 = vmatprep.mubr.msk.f32.mxu0 %vm2456_vm0, %v2457_v5  ;;  %v1033_v53 = vmul.f32 %v2675_v4, %v1032_v52  ;;  %v1034_v54 = vmul.f32 %v2689_v7, %v1032_v52  ;;  %v1048_v56 = vstv %s2783_s9  ;;  %v2173_v57 = vpack.c.bf16 %v696_v49, %v695_v45  ;;  %s2858_s25 = sld [smem:[#allocation6 + $0x87]] }
  0x83   : > { %v870_v58 = vadd.f32 %v868_v44, %v862_v50  ;;  %v871_v59 = vadd.f32 %v869_v46, %v863_v51  ;;  %v1041_v60 = vmul.f32 %v2692_v8, %v1040_v55  ;;  %v1042_v63 = vmul.f32 %v2701_v11, %v1040_v55  ;;  %s2869_s9 = sld [smem:[#allocation6 + $0x107]] }
  0x84   : > { %v1035_v61 = vadd.f32 %v1033_v53, %v1027_v47  ;;  %v1036_v62 = vadd.f32 %v1034_v54, %v1028_v48  ;;  %v1049_v3 = vmul.f32 %v2704_v12, %v1048_v56  ;;  %2174 = vmatpush3.bf16.msra.mxu0 %v2173_v57  ;;  %v1050_v14 = vmul.f32 %v2707_v13, %v1048_v56 }
  0x85   : > { %v874_v6 = vadd.f32 %v873_v36, %v870_v58  ;;  %v875_v10 = vadd.f32 %v873_v36, %v871_v59  ;;  %v1054_v15 = vstv %s2796_s26  ;;  %2178 = vmatprep.subr.bf16.mxu0 %v2455_v0  ;;  %v1207_v19 = vstv %s2801_s10  ;;  %s2871_s26 = sld [smem:[#allocation6 + $0x187]] }
  0x86   : > { %v1043_v17 = vadd.f32 %v1041_v60, %v1035_v61  ;;  %v1044_v18 = vadd.f32 %v1042_v63, %v1036_v62  ;;  %v1213_v20 = vstv %s2803_s29  ;;  %v1208_v23 = vmul.f32 %v1207_v19, %v2664_v1  ;;  %s2889_s10 = sld [smem:[#allocation7 + $0x7]]  ;;  %s287_s29 = scalar_lea.vmem [#allocation9], %s1880_s12 }
  0x87   : > { %v876_v21 = vmax.f32 %v874_v6, 0.0  ;;  %v877_v22 = vmax.f32 %v875_v10, 0.0  ;;  %v1209_v24 = vmul.f32 %v1207_v19, %v2667_v2  ;;  %2081 = vmatmul.mubr.msk.f32.vlgmr.msra.gmra.mrb[4].mxu0 %vm331_vm1, %v2772_v16  ;;  %v1214_v27 = vmul.f32 %v2675_v4, %v1213_v20  ;;  %s1999_s12 = sshll.u32 %s2440_s21, 10  ;;  %s2458_s21 = smov [#allocation9]  }
  0x88   : > { %v1051_v25 = vadd.f32 %v1049_v3, %v1043_v17  ;;  %v1052_v26 = vadd.f32 %v1050_v14, %v1044_v18  ;;  %v1215_v28 = vmul.f32 %v2689_v7, %v1213_v20  ;;  %2094 = vmatprep.mubr.msk.f32.mxu0 %vm2456_vm0, %v2457_v5  ;;  %v1221_v30 = vstv %s2812_s14  ;;  %s1762_s14 = sshll.u32 %s287_s29, 4  ;;  %s2968_s14 = int_to_ptr.vmem [resolvable:$true] %s1762_s14 }
  0x89   : > { %v2179_v29 = vpack.c.bf16 %v877_v22, %v876_v21  ;;  %v1229_v31 = vstv %s2817_s15  ;;  %v1235_v32 = vstv %s2819_s27  ;;  %v1216_v35 = vadd.f32 %v1214_v27, %v1208_v23 }
  0x8a   : > { %v1055_v33 = vadd.f32 %v1054_v15, %v1051_v25  ;;  %v1056_v34 = vadd.f32 %v1054_v15, %v1052_v26  ;;  %v1217_v36 = vadd.f32 %v1215_v28, %v1209_v24  ;;  %v1222_v37 = vmul.f32 %v2692_v8, %v1221_v30 }
  0x8b   : > { %2180 = vmatpush3.bf16.msra.mxu0 %v2179_v29  ;;  %v1223_v38 = vmul.f32 %v2701_v11, %v1221_v30  ;;  %v1230_v39 = vmul.f32 %v2704_v12, %v1229_v31  ;;  %v1231_v40 = vmul.f32 %v2707_v13, %v1229_v31  ;;  %v1388_v43 = vstv %s2830_s7  ;;  %s2966_s7 = scalar_lea.hbm %s3023_s5, %s1999_s12 }
  0x8c   : > { %2184 = vmatprep.subr.bf16.mxu0 %v2455_v0  ;;  %v1057_v41 = vmax.f32 %v1055_v33, 0.0  ;;  %v1058_v42 = vmax.f32 %v1056_v34, 0.0  ;;  %v1394_v44 = vstv %s2832_s13  ;;  %v1224_v45 = vadd.f32 %v1222_v37, %v1216_v35  ;;  %s1748_s13 = scalar_lea.sflag [#allocation4], %s2635_s8 }
  0x8d   : > { %v1225_v46 = vadd.f32 %v1223_v38, %v1217_v36  ;;  %v1389_v47 = vmul.f32 %v1388_v43, %v2664_v1  ;;  %v1390_v48 = vmul.f32 %v1388_v43, %v2667_v2  ;;  %v1395_v50 = vmul.f32 %v2675_v4, %v1394_v44 }
  0x8e   : > { %2095 = vmatmul.mubr.msk.f32.vlgmr.msra.gmra.mrb[6].mxu0 %vm331_vm1, %v2772_v16  ;;  %v2185_v49 = vpack.c.bf16 %v1058_v42, %v1057_v41  ;;  %v1396_v51 = vmul.f32 %v2689_v7, %v1394_v44  ;;  %v1402_v52 = vstv %s2839_s1  ;;  %v1232_v53 = vadd.f32 %v1230_v39, %v1224_v45  ;;  %s2358_s1 = scalar_lea.vmem %s2968_s14, 1024 }
  0x8f   : > { %2108 = vmatprep.mubr.msk.f32.mxu0 %vm2456_vm0, %v2457_v5  ;;  %v1233_v54 = vadd.f32 %v1231_v40, %v1225_v46  ;;  %v1403_v55 = vmul.f32 %v2692_v8, %v1402_v52  ;;  %v1404_v56 = vmul.f32 %v2701_v11, %v1402_v52  ;;  %v1397_v57 = vadd.f32 %v1395_v50, %v1389_v47  ;;  %p2359_p5 = scmp.ne.s32.totalorder %s2968_s14, %s2358_s1 }
  0x90   : > { %2186 = vmatpush3.bf16.msra.mxu0 %v2185_v49  ;;  %v1398_v58 = vadd.f32 %v1396_v51, %v1390_v48  ;;  %v1410_v59 = vstv %s2847_s11  ;;  %v1416_v60 = vstv %s2849_s16  ;;  %v1236_v61 = vadd.f32 %v1235_v32, %v1232_v53  ;;  %s2362_s11 = sshll.u32 %s2458_s21, 4  ;;  %s2363_s11 = int_to_ptr.vmem [resolvable:$false] %s2362_s11 }
  0x91   : > { %2190 = vmatprep.subr.bf16.mxu0 %v2455_v0  ;;  %v1237_v62 = vadd.f32 %v1235_v32, %v1233_v54  ;;  %v1411_v63 = vmul.f32 %v2704_v12, %v1410_v59  ;;  %v1412_v3 = vmul.f32 %v2707_v13, %v1410_v59  ;;  %v1405_v6 = vadd.f32 %v1403_v55, %v1397_v57  ;;  %p2360_p1 = pnand %p2359_p5, %p3044_p0  ;;  %s2364_s16 = scalar_lea.vmem %s2363_s11, 2048 }
  0x92   : > { %v1406_v10 = vadd.f32 %v1404_v56, %v1398_v58  ;;  %v1569_v14 = vstv %s2856_s17  ;;  %v1575_v15 = vstv %s2858_s25  ;;  %v1238_v17 = vmax.f32 %v1236_v61, 0.0  ;;  %p2365_p11 = scmp.lt.s32.totalorder %s2968_s14, %s2363_s11  ;;  %p2366_p7 = scmp.lt.s32.totalorder %s2364_s16, %s2358_s1 }
  0x93   : > { %2109 = vmatmul.mubr.msk.f32.vlgmr.msra.gmra.mrb[8].mxu0 %vm331_vm1, %v2772_v16  ;;  %v1239_v18 = vmax.f32 %v1237_v62, 0.0  ;;  %v1570_v19 = vmul.f32 %v1569_v14, %v2664_v1  ;;  %v1571_v20 = vmul.f32 %v1569_v14, %v2667_v2  ;;  %v1413_v21 = vadd.f32 %v1411_v63, %v1405_v6  ;;  %p2361_p6 = pneg %p2360_p1 }
  0x94   : > { %2122 = vmatprep.mubr.msk.f32.mxu0 %vm2456_vm0, %v2457_v5  ;;  %v1414_v22 = vadd.f32 %v1412_v3, %v1406_v10  ;;  %v1576_v23 = vmul.f32 %v2675_v4, %v1575_v15  ;;  %v1577_v24 = vmul.f32 %v2689_v7, %v1575_v15  ;;  %v1583_v26 = vstv %s2869_s9  ;;  %p2367_p3 = por %p2366_p7, %p2365_p11 }
  0x95   : > { %v2191_v25 = vpack.c.bf16 %v1239_v18, %v1238_v17  ;;  %v1591_v27 = vstv %s2871_s26  ;;  %v1417_v28 = vadd.f32 %v1416_v60, %v1413_v21  ;;  %v1584_v1 = vmul.f32 %v2692_v8, %v1583_v26 }
  0x96   : > { %v1418_v29 = vadd.f32 %v1416_v60, %v1414_v22  ;;  %v1578_v30 = vadd.f32 %v1576_v23, %v1570_v19  ;;  %v1579_v31 = vadd.f32 %v1577_v24, %v1571_v20  ;;  %v1585_v2 = vmul.f32 %v2701_v11, %v1583_v26  ;;  %p2368_p8 = pnand %p2367_p3, %p2361_p6 }
  0x97   : > { %2192 = vmatpush3.bf16.msra.mxu0 %v2191_v25  ;;  %v1592_v32 = vmul.f32 %v2704_v12, %v1591_v27  ;;  %v1593_v33 = vmul.f32 %v2707_v13, %v1591_v27  ;;  %v1419_v4 = vmax.f32 %v1417_v28, 0.0  ;;  %v1597_v37 = vstv %s2889_s10 }
  0x98   : > { %2196 = vmatprep.subr.bf16.mxu0 %v2455_v0  ;;  %v1420_v7 = vmax.f32 %v1418_v29, 0.0  ;;  %v1586_v34 = vadd.f32 %v1584_v1, %v1578_v30  ;;  %v1587_v35 = vadd.f32 %v1585_v2, %v1579_v31 }
  0x9a   : > { %2123 = vmatmul.mubr.msk.f32.vlgmr.msra.gmra.mrb[10].mxu0 %vm331_vm1, %v2772_v16  ;;  %v2197_v36 = vpack.c.bf16 %v1420_v7, %v1419_v4  ;;  %v1594_v8 = vadd.f32 %v1592_v32, %v1586_v34  ;;  %v1595_v11 = vadd.f32 %v1593_v33, %v1587_v35 }
  0x9b   : > { %2136 = vmatprep.mubr.msk.f32.mxu0 %vm2456_vm0, %v2457_v5 }
  0x9c   : > { %2198 = vmatpush3.bf16.msra.mxu0 %v2197_v36  ;;  %v1598_v12 = vadd.f32 %v1597_v37, %v1594_v8  ;;  %v1599_v13 = vadd.f32 %v1597_v37, %v1595_v11 }
  0x9d   : > { %2202 = vmatprep.subr.bf16.mxu0 %v2455_v0 }
  0x9e   : > { %v1600_v38 = vmax.f32 %v1598_v12, 0.0  ;;  %v1601_v39 = vmax.f32 %v1599_v13, 0.0 }
  0x9f   : > { %2137 = vmatmul.mubr.msk.f32.vlgmr.msra.gmra.mrb[12].mxu0 %vm331_vm1, %v2772_v16 }
  0xa0   : > { %2150 = vmatprep.mubr.msk.f32.mxu0 %vm2456_vm0, %v2457_v5  ;;  %v2203_v40 = vpack.c.bf16 %v1601_v39, %v1600_v38 }
  0xa2   : > { %2204 = vmatpush3.bf16.msra.mxu0 %v2203_v40 }
  0xa5   : > { %2151 = vmatmul.mubr.msk.f32.vlgmr.msra.gmra.mrb[14].mxu0 %vm331_vm1, %v2772_v16 }
 0x150   : > { %v401_v41 = vpop.f32.mrb[0].mxu0 }
 0x151   : > { %v2054_v42 = vpop.f32.mrb[1].mxu0  ;;  %2060 = vmatmul.mubr.msk.f32.vlgmr.msra.gmra.mrb[0].mxu1 %vm331_vm1, %v401_v41 }
 0x152   : > { %2171 = vmatpush3.bf16.msra.mxu1 %v2698_v9  ;;  %2073 = vmatprep.mubr.msk.f32.mxu1 %vm2456_vm0, %v2457_v5 }
 0x153   : > { %2175 = vmatprep.subr.bf16.mxu1 %v2455_v0 }
 0x154   : > { %v582_v43 = vpop.f32.mrb[2].mxu0 }
 0x155   : > { %v2068_v44 = vpop.f32.mrb[3].mxu0  ;;  %2074 = vmatmul.mubr.msk.f32.vlgmr.msra.gmra.mrb[2].mxu1 %vm331_vm1, %v582_v43 }
 0x156   : > { %2177 = vmatpush3.bf16.msra.mxu1 %v2698_v9  ;;  %2087 = vmatprep.mubr.msk.f32.mxu1 %vm2456_vm0, %v2457_v5 }
 0x157   : > { %2181 = vmatprep.subr.bf16.mxu1 %v2455_v0 }
 0x15a   : > { %v763_v16 = vpop.f32.mrb[4].mxu0 }
 0x15b   : > { %v2082_v45 = vpop.f32.mrb[5].mxu0  ;;  %2088 = vmatmul.mubr.msk.f32.vlgmr.msra.gmra.mrb[4].mxu1 %vm331_vm1, %v763_v16 }
 0x15c   : > { %2183 = vmatpush3.bf16.msra.mxu1 %v2698_v9  ;;  %2101 = vmatprep.mubr.msk.f32.mxu1 %vm2456_vm0, %v2457_v5 }
 0x15d   : > { %2187 = vmatprep.subr.bf16.mxu1 %v2455_v0 }
 0x161   : > { %v944_v46 = vpop.f32.mrb[6].mxu0 }
 0x162   : > { %v2096_v47 = vpop.f32.mrb[7].mxu0  ;;  %2102 = vmatmul.mubr.msk.f32.vlgmr.msra.gmra.mrb[6].mxu1 %vm331_vm1, %v944_v46 }
 0x163   : > { %2189 = vmatpush3.bf16.msra.mxu1 %v2698_v9  ;;  %2115 = vmatprep.mubr.msk.f32.mxu1 %vm2456_vm0, %v2457_v5 }
 0x164   : > { %2193 = vmatprep.subr.bf16.mxu1 %v2455_v0 }
 0x166   : > { %v1125_v48 = vpop.f32.mrb[8].mxu0 }
 0x167   : > { %v2110_v49 = vpop.f32.mrb[9].mxu0  ;;  %2116 = vmatmul.mubr.msk.f32.vlgmr.msra.gmra.mrb[8].mxu1 %vm331_vm1, %v1125_v48 }
 0x168   : > { %2195 = vmatpush3.bf16.msra.mxu1 %v2698_v9  ;;  %2129 = vmatprep.mubr.msk.f32.mxu1 %vm2456_vm0, %v2457_v5 }
 0x169   : > { %2199 = vmatprep.subr.bf16.mxu1 %v2455_v0 }
 0x16d   : > { %v1306_v50 = vpop.f32.mrb[10].mxu0 }
 0x16e   : > { %v2124_v51 = vpop.f32.mrb[11].mxu0  ;;  %2130 = vmatmul.mubr.msk.f32.vlgmr.msra.gmra.mrb[10].mxu1 %vm331_vm1, %v1306_v50 }
 0x16f   : > { %2201 = vmatpush3.bf16.msra.mxu1 %v2698_v9  ;;  %2143 = vmatprep.mubr.msk.f32.mxu1 %vm2456_vm0, %v2457_v5 }
 0x170   : > { %2205 = vmatprep.subr.bf16.mxu1 %v2455_v0 }
 0x172   : > { %v1487_v52 = vpop.f32.mrb[12].mxu0 }
 0x173   : > { %v2138_v53 = vpop.f32.mrb[13].mxu0  ;;  %2144 = vmatmul.mubr.msk.f32.vlgmr.msra.gmra.mrb[12].mxu1 %vm331_vm1, %v1487_v52 }
 0x174   : > { %2207 = vmatpush3.bf16.msra.mxu1 %v2698_v9  ;;  %2157 = vmatprep.mubr.msk.f32.mxu1 %vm2456_vm0, %v2457_v5 }
 0x178   : > { %v1668_v54 = vpop.f32.mrb[14].mxu0 }
 0x179   : > { %v2152_v55 = vpop.f32.mrb[15].mxu0  ;;  %2158 = vmatmul.mubr.msk.f32.vlgmr.msra.gmra.mrb[14].mxu1 %vm331_vm1, %v1668_v54 }
 0x224   : > { %v474_v56 = vpop.f32.mrb[0].mxu1 }
 0x225   : > { %479 = vst.msk [vmem:[%s287_s29] sm:$0xff] %vm478_vm2, %v474_v56  ;;  %v2061_v0 = vpop.f32.mrb[1].mxu1 }
 0x228   : > { %v655_v57 = vpop.f32.mrb[2].mxu1 }
 0x229   : > { %1908 = vst.msk [vmem:[%s287_s29 + $0x8] sm:$0xff] %vm478_vm2, %v655_v57  ;;  %v2075_v58 = vpop.f32.mrb[3].mxu1 }
 0x22e   : > { %v836_v9 = vpop.f32.mrb[4].mxu1 }
 0x22f   : > { %1922 = vst.msk [vmem:[%s287_s29 + $0x10] sm:$0xff] %vm478_vm2, %v836_v9  ;;  %v2089_v5 = vpop.f32.mrb[5].mxu1 }
 0x235   : > { %v1017_v59 = vpop.f32.mrb[6].mxu1 }
 0x236   : > { %1936 = vst.msk [vmem:[%s287_s29 + $0x18] sm:$0xff] %vm478_vm2, %v1017_v59  ;;  %v2103_v60 = vpop.f32.mrb[7].mxu1 }
 0x23a   : > { %v1198_v61 = vpop.f32.mrb[8].mxu1 }
 0x23b   : > { %1950 = vst.msk [vmem:[%s287_s29 + $0x20] sm:$0xff] %vm478_vm2, %v1198_v61  ;;  %v2117_v62 = vpop.f32.mrb[9].mxu1 }
 0x241   : > { %v1379_v63 = vpop.f32.mrb[10].mxu1 }
 0x242   : > { %1964 = vst.msk [vmem:[%s287_s29 + $0x28] sm:$0xff] %vm478_vm2, %v1379_v63  ;;  %v2131_v3 = vpop.f32.mrb[11].mxu1 }
 0x246   : > { %v1560_v6 = vpop.f32.mrb[12].mxu1 }
 0x247   : > { %1978 = vst.msk [vmem:[%s287_s29 + $0x30] sm:$0xff] %vm478_vm2, %v1560_v6  ;;  %v2145_v10 = vpop.f32.mrb[13].mxu1 }
 0x24c   : > { %v1741_v14 = vpop.f32.mrb[14].mxu1 }
 0x24d   : > { %1992 = vst.msk [vmem:[%s287_s29 + $0x38] sm:$0xff] %vm478_vm2, %v1741_v14  ;;  %v2159_v15 = vpop.f32.mrb[15].mxu1 }
 0x24e   : > { %2371 = shalt.err (!%p2368_p8)
}
 0x24f   : > { %s2372_s17 = scalar_lea.hbm %s2966_s7, 1024  ;;  %s2376_s26 = scalar_lea.hbm %s3023_s5, 2048 }
 0x250   : > { %p2373_p13 = scmp.ne.s32.totalorder %s2966_s7, %s2372_s17  ;;  %p2377_p12 = scmp.lt.u32.totalorder %s2966_s7, %s3023_s5 }
 0x251   : > { %p2378_p2 = scmp.lt.u32.totalorder %s2376_s26, %s2372_s17  ;;  %p2380_p5 = scmp.lt.u32.totalorder %s2372_s17, %s2966_s7 }
 0x252   : > { %p2374_p4 = pnand %p2373_p13, %p3044_p0 }
 0x253   : > { %p2379_p9 = por %p2378_p2, %p2377_p12 }
 0x254   : > { %p2375_p10 = pneg %p2374_p4 }
 0x255   : > { %p2381_p1 = por %p2380_p5, %p2379_p9 }
 0x257   : > { %p2382_p6 = pnand %p2381_p1, %p2375_p10 }
 0x259   : > { %2385 = shalt.err (!%p2382_p6)
}
 0x25a   : > { %s2459_s12 = smov 128   ;;  %s2460_s15 = smov 8  }
 0x25b   : > { %2218 = dma.vmem_to_hbm [thread:$0]  (%p3044_p0), %s2968_s14, 1024, %s2966_s7, %s1748_s13, %s2459_s12, %s2459_s12, %s2460_s15  }
 0x25c PF: > { %s1777_s27 = sand.u32 1, %s2428_s18   ;;  %p3045_p11 = scmp.ne.s32.totalorder %s3035_s6, 0 }
 0x25d   : > { %p3046_p7 = scmp.ge.s32.totalorder %s2448_s23, 2  ;;  %s1778_s1 = scalar_lea.sflag [#allocation4], %s1777_s27 }
 0x25f   : > { %p2232_p3 = pnand %p3046_p7, %p3045_p11 }
 0x261   : > { %2423 = dma.done.wait (!%p2232_p3), %s1778_s1, 1024  }
 0x262   : > { %2425 = vsyncadd (!%p2232_p3), %s1778_s1, 4294966272  ;;  %s23_s23 = sadd.s32 1, %s2448_s23   ;;  %s3047_s18 = smov %s2432_s19 }
 0x263   : > { %p20_p8 = scmp.ge.s32.totalorder %s23_s23, 4   ;;  %s3048_s19 = smov %s2436_s20 }
 0x264   : > { %s3049_s20 = smov %s2602_s24  ;;  %s3050_s21 = smov %s2444_s22 }
 0x265   : > { %s3051_s22 = smov %s3053_s28  ;;  %22 = sbr.rel (!%p20_p8) target bundleno = 10 (0xa), region = 104 }
 0x26c   :  { %1783 = vsyncpa [#allocation3], 1 }
 0x26d   :  { %1785 = vsyncpa [#allocation3 + $0x1], 1 }
 0x26e   :  { %1786 = vsyncpa [#allocation4], 1 }
 0x26f   :  { %1788 = vsyncpa [#allocation4 + $0x1], 1 }
 0x270   :  { %1789 = vsyncpa [#allocation5], 1 }
 0x271   :  { %1791 = vsyncpa [#allocation5 + $0x1], 1 }
 0x272   :  { %1792 = vsyncpa [#allocation8], 1 }

</bundles_post_ra>
